<compile_context>
chip_gen: v6e
topology: v6e:2x2x1
jax: 0.10.0
libtpu: 0.0.40
codegen_flags: <defaults>
</compile_context>

<pallas_src>
import functools

import jax
import jax.numpy as jnp
from jax import lax
from jax.experimental import pallas as pl
from jax.experimental.pallas import tpu as pltpu


# -----------------------------------------------------------------------------
# Pallas kernel: one grid step = one tile of `batch_tile` batch elements,
# all R dilation layers unrolled inside.
# -----------------------------------------------------------------------------
def wave_head_kernel(x_ref, z_ref, wc_ref, bc_ref,
                     w_sg0_ref, w_sg1_ref, w_cond_ref, w_rs_ref,
                     out_ref, xpad_ref, *, seq_len):
    # x_ref:      (M, C_in)     flattened batch-tile input (M = batch_tile * L)
    # z_ref:      (M, 1)        conditioning
    # wc_ref:     (C_in, Cp)    causal 1x1 weight,  bc_ref: (1, Cp) bias
    # w_sg0_ref:  (R, Cp, 2Cp)  tap x[t-(d+1)] -> [signal | gate]
    # w_sg1_ref:  (R, Cp, 2Cp)  tap x[t-1]     -> [signal | gate]
    # w_cond_ref: (R, 1, 2Cp)   conditioning   -> [signal | gate]
    # w_rs_ref:   (R, Cp, 2Cp)  xg             -> [res | skip]
    # out_ref:    (M, 2Cp)      [x_out | cum_skip] slab
    # xpad_ref:   (pad+M, Cp)   zero-topped residual-stream scratch
    M, _ = x_ref.shape
    Cp = wc_ref.shape[1]
    R = w_sg0_ref.shape[0]
    pad = xpad_ref.shape[0] - M
    L = seq_len

    # Within-batch time index of every flattened row (batches stacked on M);
    # used to mask tap reads that would leak across batch boundaries.
    t_idx = lax.broadcasted_iota(jnp.int32, (M, 1), 0) % L
    keep_b = t_idx >= 1                                   # validity of x[t-1] tap

    zf = z_ref[...]                                       # (M, 1)

    # causal_blocks[0]: 1x1 conv + bias onto the lane-padded channel width.
    x0 = jnp.dot(x_ref[...], wc_ref[...],
                 preferred_element_type=jnp.float32) + bc_ref[...]

    # Zero halo rows (defensive; masks already enforce causality) + residual.
    xpad_ref[pl.ds(0, pad), :] = jnp.zeros((pad, Cp), jnp.float32)
    xpad_ref[pl.ds(pad, M), :] = x0                       # 8-aligned sublane offset

    skip_acc = jnp.zeros((M, Cp), jnp.float32)
    x_new = x0

    # Static unroll over dilation rates: resident weights, static tap offsets,
    # static r==0 branch.
    for ii in range(R):
        d = 1 << ii                                       # dilation = 2**ii
        # taps: xa[t] = x[t-(d+1)], xb[t] = x[t-1]  (zeros for t out of range)
        xa = jnp.where(t_idx >= d + 1,
                       xpad_ref[pl.ds(pad - 1 - d, M), :], 0.0)
        xb = jnp.where(keep_b,
                       xpad_ref[pl.ds(pad - 1, M), :], 0.0)

        # Fused [signal | gate] over both taps + fused conditioning 1x1.
        sg = (jnp.dot(xa, w_sg0_ref[ii], preferred_element_type=jnp.float32)
              + jnp.dot(xb, w_sg1_ref[ii], preferred_element_type=jnp.float32)
              + zf * w_cond_ref[ii])
        signal = sg[:, :Cp]                               # lane-tile-aligned splits
        gate = sg[:, Cp:]
        xg = signal * jax.nn.sigmoid(gate)                # module applies no tanh

        # Fused [res | skip] 1x1 projections.
        rs = jnp.dot(xg, w_rs_ref[ii], preferred_element_type=jnp.float32)
        skip_acc = skip_acc + rs[:, Cp:]

        x_new = (x0 + rs[:, :Cp]) if ii == 0 else (rs[:, :Cp] + xg)
        if ii + 1 < R:                                    # last layer's stream unused
            xpad_ref[pl.ds(pad, M), :] = x_new

    # Single lane-dense output slab: two unmasked, tile-aligned half stores.
    out_ref[:, :Cp] = x_new
    out_ref[:, Cp:] = skip_acc


# -----------------------------------------------------------------------------
# Wrapper
# -----------------------------------------------------------------------------
def _round_up(v, m):
    return (v + m - 1) // m * m


def _pick_batch_tile(N, L, target_rows=512):
    """Pack batch elements per grid step to fill the MXU M dim (the big lever
    for small C), but keep >=2 grid blocks when possible (v7x has 2 TCs)."""
    divisors = [d for d in range(1, N + 1) if N % d == 0]

    def legal(d):                       # BlockSpec sublane rule for (d*L, .) blocks
        return (d * L) % 8 == 0 or d == N

    cands = [d for d in divisors if legal(d) and d * L <= target_rows]
    if not cands:
        cands = [d for d in divisors if legal(d)] or [N]
    multi = [d for d in cands if N // d >= 2]
    return max(multi) if multi else max(cands)


def wave_head_forward(x_ncl, z_ncl, params, *, batch_tile=None):
    """x_ncl: (N, C_in, L), z_ncl: (N, 1, L) -> (x, cum_skip) each (N, C_out, L)."""
    N, C_in, L = x_ncl.shape
    C = params["w_caus"].shape[1]
    R = params["ws_sig"].shape[0]
    Cp = _round_up(C, 128)                    # lane-dense channel width
    pad = _round_up(2 ** (R - 1) + 1, 8)      # causal halo rows (8-aligned writes)

    if batch_tile is None:
        batch_tile = _pick_batch_tile(N, L)
    NB = N // batch_tile
    M = batch_tile * L

    # ---- one-time weight fusion + zero-padding to the lane-dense width ------
    def pad_last(w):
        return jnp.pad(w, [(0, 0)] * (w.ndim - 1) + [(0, Cp - w.shape[-1])])

    def pad_io(w):
        return jnp.pad(w, [(0, 0)] * (w.ndim - 2)
                       + [(0, Cp - w.shape[-2]), (0, Cp - w.shape[-1])])

    f32 = jnp.float32
    w_caus = pad_last(params["w_caus"]).astype(f32)                 # (C_in, Cp)
    b_caus = pad_last(params["b_caus"]).astype(f32)                 # (1, Cp)
    ws_sig = pad_io(params["ws_sig"]).astype(f32)                   # (R, 2, Cp, Cp)
    ws_gate = pad_io(params["ws_gate"]).astype(f32)
    w_sg0 = jnp.concatenate([ws_sig[:, 0], ws_gate[:, 0]], axis=-1)  # (R, Cp, 2Cp)
    w_sg1 = jnp.concatenate([ws_sig[:, 1], ws_gate[:, 1]], axis=-1)  # (R, Cp, 2Cp)
    w_cond = jnp.concatenate([pad_last(params["w_csig"]),
                              pad_last(params["w_cgate"])],
                             axis=-1).astype(f32)                   # (R, 1, 2Cp)
    w_rs = jnp.concatenate([pad_io(params["w_res"]),
                            pad_io(params["w_skip"])],
                           axis=-1).astype(f32)                     # (R, Cp, 2Cp)

    # NCL -> flattened (N*L, C) once at the boundary: batch/time stacked on
    # sublanes, channels on lanes (per-batch causality handled in-kernel).
    x_flat = jnp.transpose(x_ncl, (0, 2, 1)).astype(f32).reshape(N * L, C_in)
    z_flat = jnp.transpose(z_ncl, (0, 2, 1)).astype(f32).reshape(N * L, 1)

    # Generation-aware VMEM budget: ~96 MiB on v5e/v6e (128 MiB physical),
    # ~48 MiB on v7x (64 MiB physical); conservative fallback if query fails.
    try:
        vmem_cap = pltpu.get_tpu_info().vmem_capacity_bytes
    except Exception:
        vmem_cap = 64 * 1024 * 1024
    vmem_limit = max(32 * 1024 * 1024,
                     min(int(vmem_cap) * 3 // 4, 96 * 1024 * 1024))

    kernel = functools.partial(wave_head_kernel, seq_len=L)

    out = pl.pallas_call(
        kernel,
        out_shape=jax.ShapeDtypeStruct((N * L, 2 * Cp), f32),
        grid=(NB,),
        in_specs=[
            pl.BlockSpec((M, C_in), lambda n: (n, 0)),             # x (batch tile)
            pl.BlockSpec((M, 1), lambda n: (n, 0)),                # z (batch tile)
            pl.BlockSpec((C_in, Cp), lambda n: (0, 0)),            # causal 1x1 W (resident)
            pl.BlockSpec((1, Cp), lambda n: (0, 0)),               # causal 1x1 b (resident)
            pl.BlockSpec((R, Cp, 2 * Cp), lambda n: (0, 0, 0)),    # sig|gate tap0 stack
            pl.BlockSpec((R, Cp, 2 * Cp), lambda n: (0, 0, 0)),    # sig|gate tap1 stack
            pl.BlockSpec((R, 1, 2 * Cp), lambda n: (0, 0, 0)),     # cond sig|gate stack
            pl.BlockSpec((R, Cp, 2 * Cp), lambda n: (0, 0, 0)),    # res|skip stack
        ],
        out_specs=pl.BlockSpec((M, 2 * Cp), lambda n: (n, 0)),
        scratch_shapes=[pltpu.VMEM((pad + M, Cp), f32)],           # residual stream
        compiler_params=pltpu.CompilerParams(
            dimension_semantics=("parallel",),
            vmem_limit_bytes=vmem_limit,
        ),
    )(x_flat, z_flat, w_caus, b_caus, w_sg0, w_sg1, w_cond, w_rs)

    out_cl = jnp.transpose(out.reshape(N, L, 2 * Cp), (0, 2, 1))   # single transpose
    return out_cl[:, :C, :], out_cl[:, Cp:Cp + C, :]


# -----------------------------------------------------------------------------
# Deterministic parameter init (xavier-uniform style, synthetic)
# -----------------------------------------------------------------------------
def init_params(key, C_in, C, R):
    def xavier(k, shape, fan_in, fan_out):
        lim = (6.0 / (fan_in + fan_out)) ** 0.5
        return jax.random.uniform(k, shape, jnp.float32, -lim, lim)

    ks = jax.random.split(key, 8)
    return {
        "w_caus": xavier(ks[0], (C_in, C), C_in, C),       # torch (C,C_in,1) transposed
        "b_caus": 0.1 * jax.random.normal(ks[7], (1, C), jnp.float32),
        "ws_sig": xavier(ks[1], (R, 2, C, C), 2 * C, C),   # [layer, tap, in, out]
        "ws_gate": xavier(ks[2], (R, 2, C, C), 2 * C, C),
        "w_csig": xavier(ks[3], (R, 1, C), 1, C),
        "w_cgate": xavier(ks[4], (R, 1, C), 1, C),
        "w_res": xavier(ks[5], (R, C, C), C, C),
        "w_skip": xavier(ks[6], (R, C, C), C, C),
    }


# -----------------------------------------------------------------------------
# Pure-JAX reference replicating PyTorch Conv1d (pad both sides, then slice)
# -----------------------------------------------------------------------------
def reference_forward(x, z, p):
    dn = ("NCH", "OIH", "NCH")

    def conv1d(inp, rhs, pad, dil):
        return lax.conv_general_dilated(inp, rhs, window_strides=(1,),
                                        padding=[(pad, pad)], rhs_dilation=(dil,),
                                        dimension_numbers=dn)

    rhs_c = jnp.transpose(p["w_caus"], (1, 0))[:, :, None]
    x = conv1d(x, rhs_c, 0, 1) + p["b_caus"][0][None, :, None]
    orig_x = x
    cum_skip = 0.0
    R = p["ws_sig"].shape[0]
    for ii in range(R):
        d = 2 ** ii
        pad = d + 1  # mask 'A' (ii=0): pad=kernel_size=2; mask 'B': d*(k-1)+1
        w_sig = jnp.transpose(p["ws_sig"][ii], (2, 1, 0))   # (C_out, C_in, 2)
        w_gate = jnp.transpose(p["ws_gate"][ii], (2, 1, 0))
        sig = conv1d(x, w_sig, pad, d)[:, :, :-(pad + 1)]
        gat = conv1d(x, w_gate, pad, d)[:, :, :-(pad + 1)]
        signal = sig + p["w_csig"][ii][0][None, :, None] * z
        gate = gat + p["w_cgate"][ii][0][None, :, None] * z
        xg = signal * jax.nn.sigmoid(gate)
        skip = conv1d(xg, jnp.transpose(p["w_skip"][ii], (1, 0))[:, :, None], 0, 1)
        res = conv1d(xg, jnp.transpose(p["w_res"][ii], (1, 0))[:, :, None], 0, 1)
        x = orig_x + res if ii == 0 else res + xg
        cum_skip = cum_skip + skip
    return x, cum_skip


if __name__ == "__main__":
    # kernel_size fixed at 2 (module default); N=4 exercises batch packing
    # (batch_tile=2) while keeping 2 parallel grid blocks.
    N, C_in, C_out, L, R = 4, 4, 8, 16, 3

    key = jax.random.PRNGKey(0)
    kx, kz, kp = jax.random.split(key, 3)
    x = jax.random.normal(kx, (N, C_in, L), jnp.float32)
    z = jax.random.normal(kz, (N, 1, L), jnp.float32)
    params = init_params(kp, C_in, C_out, R)

    out_x, out_skip = wave_head_forward(x, z, params)
    jax.block_until_ready((out_x, out_skip))

    ref_x, ref_skip = reference_forward(x, z, params)
    assert jnp.allclose(out_x, ref_x, rtol=1e-5, atol=1e-5), "x mismatch"
    assert jnp.allclose(out_skip, ref_skip, rtol=1e-5, atol=1e-5), "skip mismatch"

    print("KERNEL_OK")
</pallas_src>

<mosaic_0001>
module attributes {stable_mosaic.version = 11 : i64} {
  func.func @wave_head_kernel(%arg0: i32, %arg1: memref<32x4xf32, #tpu.memory_space<vmem>>, %arg2: memref<32x1xf32, #tpu.memory_space<vmem>>, %arg3: memref<4x128xf32, #tpu.memory_space<vmem>>, %arg4: memref<1x128xf32, #tpu.memory_space<vmem>>, %arg5: memref<3x128x256xf32, #tpu.memory_space<vmem>>, %arg6: memref<3x128x256xf32, #tpu.memory_space<vmem>>, %arg7: memref<3x1x256xf32, #tpu.memory_space<vmem>>, %arg8: memref<3x128x256xf32, #tpu.memory_space<vmem>>, %arg9: memref<32x256xf32, #tpu.memory_space<vmem>>, %arg10: memref<40x128xf32, #tpu.memory_space<vmem>>) attributes {dimension_semantics = [#tpu.dimension_semantics<parallel>], iteration_bounds = array<i64: 2>, scalar_prefetch = 0 : i64, scratch_operands = 1 : i64, tpu.core_type = #tpu.core_type<tc>, window_params = [{transform_indices = @transform_0, window_bounds = array<i64: 32, 4>}, {transform_indices = @transform_1, window_bounds = array<i64: 32, 1>}, {pipeline_mode = #tpu.pipeline_mode<synchronous>, transform_indices = @transform_2, window_bounds = array<i64: 4, 128>}, {pipeline_mode = #tpu.pipeline_mode<synchronous>, transform_indices = @transform_3, window_bounds = array<i64: 1, 128>}, {pipeline_mode = #tpu.pipeline_mode<synchronous>, transform_indices = @transform_4, window_bounds = array<i64: 3, 128, 256>}, {pipeline_mode = #tpu.pipeline_mode<synchronous>, transform_indices = @transform_5, window_bounds = array<i64: 3, 128, 256>}, {pipeline_mode = #tpu.pipeline_mode<synchronous>, transform_indices = @transform_6, window_bounds = array<i64: 3, 1, 256>}, {pipeline_mode = #tpu.pipeline_mode<synchronous>, transform_indices = @transform_7, window_bounds = array<i64: 3, 128, 256>}, {transform_indices = @transform_8, window_bounds = array<i64: 32, 256>}]} {
    %0 = tpu.iota {dimensions = array<i32: 0>} : vector<32x1xi32>
    %c16_i32 = arith.constant 16 : i32
    %c0_i32 = arith.constant 0 : i32
    %1 = arith.cmpi eq, %c16_i32, %c0_i32 : i32
    %c1_i32 = arith.constant 1 : i32
    %2 = arith.select %1, %c1_i32, %c16_i32 : i32
    %3 = vector.broadcast %2 : i32 to vector<32x1xi32>
    %4 = arith.remsi %0, %3 : vector<32x1xi32>
    %c0_i32_0 = arith.constant 0 : i32
    %5 = vector.broadcast %c0_i32_0 : i32 to vector<32x1xi32>
    %6 = arith.cmpi ne, %4, %5 : vector<32x1xi32>
    %c0_i32_1 = arith.constant 0 : i32
    %7 = vector.broadcast %c0_i32_1 : i32 to vector<32x1xi32>
    %8 = arith.cmpi slt, %4, %7 : vector<32x1xi32>
    %c0_i32_2 = arith.constant 0 : i32
    %9 = arith.cmpi slt, %2, %c0_i32_2 : i32
    %10 = vector.broadcast %9 : i1 to vector<32x1xi1>
    %11 = vector.broadcast %10 : vector<32x1xi1> to vector<32x1xi1>
    %12 = arith.xori %8, %11 : vector<32x1xi1>
    %13 = arith.andi %12, %6 : vector<32x1xi1>
    %14 = vector.broadcast %2 : i32 to vector<32x1xi32>
    %15 = arith.addi %4, %14 : vector<32x1xi32>
    %16 = arith.select %13, %15, %4 : vector<32x1xi1>, vector<32x1xi32>
    %c1_i32_3 = arith.constant 1 : i32
    %17 = vector.broadcast %c1_i32_3 : i32 to vector<32x1xi32>
    %18 = arith.cmpi sge, %16, %17 : vector<32x1xi32>
    %c0 = arith.constant 0 : index
    %c0_4 = arith.constant 0 : index
    %19 = vector.load %arg2[%c0, %c0_4] : memref<32x1xf32, #tpu.memory_space<vmem>>, vector<32x1xf32>
    %c0_5 = arith.constant 0 : index
    %c0_6 = arith.constant 0 : index
    %20 = vector.load %arg1[%c0_5, %c0_6] : memref<32x4xf32, #tpu.memory_space<vmem>>, vector<32x4xf32>
    %c0_7 = arith.constant 0 : index
    %c0_8 = arith.constant 0 : index
    %21 = vector.load %arg3[%c0_7, %c0_8] : memref<4x128xf32, #tpu.memory_space<vmem>>, vector<4x128xf32>
    %cst = arith.constant dense<0.000000e+00> : vector<32x128xf32>
    %22 = tpu.matmul %20, %21, %cst {dimension_numbers = #tpu.dot_dimension_numbers<[1], [0], [0], [1], [0, 0, 1, 1], [], []>} : vector<32x4xf32>, vector<4x128xf32>, vector<32x128xf32> -> vector<32x128xf32>
    %c0_9 = arith.constant 0 : index
    %c0_10 = arith.constant 0 : index
    %23 = vector.load %arg4[%c0_9, %c0_10] : memref<1x128xf32, #tpu.memory_space<vmem>>, vector<1x128xf32>
    %24 = vector.broadcast %23 : vector<1x128xf32> to vector<32x128xf32>
    %25 = arith.addf %22, %24 : vector<32x128xf32>
    %cst_11 = arith.constant 0.000000e+00 : f32
    %26 = vector.broadcast %cst_11 : f32 to vector<8x128xf32>
    %c0_12 = arith.constant 0 : index
    %c0_13 = arith.constant 0 : index
    %27 = vector.load %arg10[%c0_12, %c0_13] : memref<40x128xf32, #tpu.memory_space<vmem>>, vector<8x128xf32>
    tpu.vector_store %arg10[%c0_12, %c0_13], %26 {strides = array<i32>} : memref<40x128xf32, #tpu.memory_space<vmem>>, vector<8x128xf32>,
    %c8 = arith.constant 8 : index
    %c0_14 = arith.constant 0 : index
    %28 = vector.load %arg10[%c8, %c0_14] : memref<40x128xf32, #tpu.memory_space<vmem>>, vector<32x128xf32>
    tpu.vector_store %arg10[%c8, %c0_14], %25 {strides = array<i32>} : memref<40x128xf32, #tpu.memory_space<vmem>>, vector<32x128xf32>,
    %cst_15 = arith.constant 0.000000e+00 : f32
    %29 = vector.broadcast %cst_15 : f32 to vector<32x128xf32>
    %c2_i32 = arith.constant 2 : i32
    %30 = vector.broadcast %c2_i32 : i32 to vector<32x1xi32>
    %31 = arith.cmpi sge, %16, %30 : vector<32x1xi32>
    %c6 = arith.constant 6 : index
    %c0_16 = arith.constant 0 : index
    %32 = vector.load %arg10[%c6, %c0_16] : memref<40x128xf32, #tpu.memory_space<vmem>>, vector<32x128xf32>
    %cst_17 = arith.constant 0.000000e+00 : f32
    %33 = vector.shape_cast %31 : vector<32x1xi1> to vector<32x1xi1>
    %34 = vector.broadcast %33 : vector<32x1xi1> to vector<32x128xi1>
    %35 = vector.broadcast %cst_17 : f32 to vector<32x128xf32>
    %36 = arith.select %34, %32, %35 : vector<32x128xi1>, vector<32x128xf32>
    %c7 = arith.constant 7 : index
    %c0_18 = arith.constant 0 : index
    %37 = vector.load %arg10[%c7, %c0_18] : memref<40x128xf32, #tpu.memory_space<vmem>>, vector<32x128xf32>
    %cst_19 = arith.constant 0.000000e+00 : f32
    %38 = vector.shape_cast %18 : vector<32x1xi1> to vector<32x1xi1>
    %39 = vector.broadcast %38 : vector<32x1xi1> to vector<32x128xi1>
    %40 = vector.broadcast %cst_19 : f32 to vector<32x128xf32>
    %41 = arith.select %39, %37, %40 : vector<32x128xi1>, vector<32x128xf32>
    %c0_20 = arith.constant 0 : index
    %c0_21 = arith.constant 0 : index
    %c0_22 = arith.constant 0 : index
    %42 = vector.load %arg5[%c0_20, %c0_21, %c0_22] : memref<3x128x256xf32, #tpu.memory_space<vmem>>, vector<1x128x256xf32>
    %43 = vector.shape_cast %42 : vector<1x128x256xf32> to vector<128x256xf32>
    %cst_23 = arith.constant dense<0.000000e+00> : vector<32x256xf32>
    %44 = tpu.matmul %36, %43, %cst_23 {dimension_numbers = #tpu.dot_dimension_numbers<[1], [0], [0], [1], [0, 0, 1, 1], [], []>} : vector<32x128xf32>, vector<128x256xf32>, vector<32x256xf32> -> vector<32x256xf32>
    %c0_24 = arith.constant 0 : index
    %c0_25 = arith.constant 0 : index
    %c0_26 = arith.constant 0 : index
    %45 = vector.load %arg6[%c0_24, %c0_25, %c0_26] : memref<3x128x256xf32, #tpu.memory_space<vmem>>, vector<1x128x256xf32>
    %46 = vector.shape_cast %45 : vector<1x128x256xf32> to vector<128x256xf32>
    %cst_27 = arith.constant dense<0.000000e+00> : vector<32x256xf32>
    %47 = tpu.matmul %41, %46, %cst_27 {dimension_numbers = #tpu.dot_dimension_numbers<[1], [0], [0], [1], [0, 0, 1, 1], [], []>} : vector<32x128xf32>, vector<128x256xf32>, vector<32x256xf32> -> vector<32x256xf32>
    %48 = arith.addf %44, %47 : vector<32x256xf32>
    %c0_28 = arith.constant 0 : index
    %c0_29 = arith.constant 0 : index
    %c0_30 = arith.constant 0 : index
    %49 = vector.load %arg7[%c0_28, %c0_29, %c0_30] : memref<3x1x256xf32, #tpu.memory_space<vmem>>, vector<1x1x256xf32>
    %50 = vector.shape_cast %49 : vector<1x1x256xf32> to vector<1x256xf32>
    %51 = vector.broadcast %19 : vector<32x1xf32> to vector<32x256xf32>
    %52 = vector.broadcast %50 : vector<1x256xf32> to vector<32x256xf32>
    %53 = arith.mulf %51, %52 : vector<32x256xf32>
    %54 = arith.addf %48, %53 : vector<32x256xf32>
    %55 = vector.extract_strided_slice %54 {offsets = [0, 0], sizes = [32, 128], strides = [1, 1]} : vector<32x256xf32> to vector<32x128xf32>
    %56 = vector.extract_strided_slice %54 {offsets = [0, 128], sizes = [32, 128], strides = [1, 1]} : vector<32x256xf32> to vector<32x128xf32>
    %57 = arith.negf %56 : vector<32x128xf32>
    %58 = math.exp %57 : vector<32x128xf32>
    %cst_31 = arith.constant 1.000000e+00 : f32
    %59 = vector.broadcast %cst_31 : f32 to vector<32x128xf32>
    %60 = arith.addf %59, %58 : vector<32x128xf32>
    %61 = arith.divf %59, %60 : vector<32x128xf32>
    %62 = arith.mulf %55, %61 : vector<32x128xf32>
    %c0_32 = arith.constant 0 : index
    %c0_33 = arith.constant 0 : index
    %c0_34 = arith.constant 0 : index
    %63 = vector.load %arg8[%c0_32, %c0_33, %c0_34] : memref<3x128x256xf32, #tpu.memory_space<vmem>>, vector<1x128x256xf32>
    %64 = vector.shape_cast %63 : vector<1x128x256xf32> to vector<128x256xf32>
    %cst_35 = arith.constant dense<0.000000e+00> : vector<32x256xf32>
    %65 = tpu.matmul %62, %64, %cst_35 {dimension_numbers = #tpu.dot_dimension_numbers<[1], [0], [0], [1], [0, 0, 1, 1], [], []>} : vector<32x128xf32>, vector<128x256xf32>, vector<32x256xf32> -> vector<32x256xf32>
    %66 = vector.extract_strided_slice %65 {offsets = [0, 128], sizes = [32, 128], strides = [1, 1]} : vector<32x256xf32> to vector<32x128xf32>
    %67 = arith.addf %29, %66 : vector<32x128xf32>
    %68 = vector.extract_strided_slice %65 {offsets = [0, 0], sizes = [32, 128], strides = [1, 1]} : vector<32x256xf32> to vector<32x128xf32>
    %69 = arith.addf %25, %68 : vector<32x128xf32>
    %c8_36 = arith.constant 8 : index
    %c0_37 = arith.constant 0 : index
    %70 = vector.load %arg10[%c8_36, %c0_37] : memref<40x128xf32, #tpu.memory_space<vmem>>, vector<32x128xf32>
    tpu.vector_store %arg10[%c8_36, %c0_37], %69 {strides = array<i32>} : memref<40x128xf32, #tpu.memory_space<vmem>>, vector<32x128xf32>,
    %c3_i32 = arith.constant 3 : i32
    %71 = vector.broadcast %c3_i32 : i32 to vector<32x1xi32>
    %72 = arith.cmpi sge, %16, %71 : vector<32x1xi32>
    %c5 = arith.constant 5 : index
    %c0_38 = arith.constant 0 : index
    %73 = vector.load %arg10[%c5, %c0_38] : memref<40x128xf32, #tpu.memory_space<vmem>>, vector<32x128xf32>
    %cst_39 = arith.constant 0.000000e+00 : f32
    %74 = vector.shape_cast %72 : vector<32x1xi1> to vector<32x1xi1>
    %75 = vector.broadcast %74 : vector<32x1xi1> to vector<32x128xi1>
    %76 = vector.broadcast %cst_39 : f32 to vector<32x128xf32>
    %77 = arith.select %75, %73, %76 : vector<32x128xi1>, vector<32x128xf32>
    %c7_40 = arith.constant 7 : index
    %c0_41 = arith.constant 0 : index
    %78 = vector.load %arg10[%c7_40, %c0_41] : memref<40x128xf32, #tpu.memory_space<vmem>>, vector<32x128xf32>
    %cst_42 = arith.constant 0.000000e+00 : f32
    %79 = vector.shape_cast %18 : vector<32x1xi1> to vector<32x1xi1>
    %80 = vector.broadcast %79 : vector<32x1xi1> to vector<32x128xi1>
    %81 = vector.broadcast %cst_42 : f32 to vector<32x128xf32>
    %82 = arith.select %80, %78, %81 : vector<32x128xi1>, vector<32x128xf32>
    %c1 = arith.constant 1 : index
    %c0_43 = arith.constant 0 : index
    %c0_44 = arith.constant 0 : index
    %83 = vector.load %arg5[%c1, %c0_43, %c0_44] : memref<3x128x256xf32, #tpu.memory_space<vmem>>, vector<1x128x256xf32>
    %84 = vector.shape_cast %83 : vector<1x128x256xf32> to vector<128x256xf32>
    %cst_45 = arith.constant dense<0.000000e+00> : vector<32x256xf32>
    %85 = tpu.matmul %77, %84, %cst_45 {dimension_numbers = #tpu.dot_dimension_numbers<[1], [0], [0], [1], [0, 0, 1, 1], [], []>} : vector<32x128xf32>, vector<128x256xf32>, vector<32x256xf32> -> vector<32x256xf32>
    %c1_46 = arith.constant 1 : index
    %c0_47 = arith.constant 0 : index
    %c0_48 = arith.constant 0 : index
    %86 = vector.load %arg6[%c1_46, %c0_47, %c0_48] : memref<3x128x256xf32, #tpu.memory_space<vmem>>, vector<1x128x256xf32>
    %87 = vector.shape_cast %86 : vector<1x128x256xf32> to vector<128x256xf32>
    %cst_49 = arith.constant dense<0.000000e+00> : vector<32x256xf32>
    %88 = tpu.matmul %82, %87, %cst_49 {dimension_numbers = #tpu.dot_dimension_numbers<[1], [0], [0], [1], [0, 0, 1, 1], [], []>} : vector<32x128xf32>, vector<128x256xf32>, vector<32x256xf32> -> vector<32x256xf32>
    %89 = arith.addf %85, %88 : vector<32x256xf32>
    %c1_50 = arith.constant 1 : index
    %c0_51 = arith.constant 0 : index
    %c0_52 = arith.constant 0 : index
    %90 = vector.load %arg7[%c1_50, %c0_51, %c0_52] : memref<3x1x256xf32, #tpu.memory_space<vmem>>, vector<1x1x256xf32>
    %91 = vector.shape_cast %90 : vector<1x1x256xf32> to vector<1x256xf32>
    %92 = vector.broadcast %19 : vector<32x1xf32> to vector<32x256xf32>
    %93 = vector.broadcast %91 : vector<1x256xf32> to vector<32x256xf32>
    %94 = arith.mulf %92, %93 : vector<32x256xf32>
    %95 = arith.addf %89, %94 : vector<32x256xf32>
    %96 = vector.extract_strided_slice %95 {offsets = [0, 0], sizes = [32, 128], strides = [1, 1]} : vector<32x256xf32> to vector<32x128xf32>
    %97 = vector.extract_strided_slice %95 {offsets = [0, 128], sizes = [32, 128], strides = [1, 1]} : vector<32x256xf32> to vector<32x128xf32>
    %98 = arith.negf %97 : vector<32x128xf32>
    %99 = math.exp %98 : vector<32x128xf32>
    %cst_53 = arith.constant 1.000000e+00 : f32
    %100 = vector.broadcast %cst_53 : f32 to vector<32x128xf32>
    %101 = arith.addf %100, %99 : vector<32x128xf32>
    %102 = arith.divf %100, %101 : vector<32x128xf32>
    %103 = arith.mulf %96, %102 : vector<32x128xf32>
    %c1_54 = arith.constant 1 : index
    %c0_55 = arith.constant 0 : index
    %c0_56 = arith.constant 0 : index
    %104 = vector.load %arg8[%c1_54, %c0_55, %c0_56] : memref<3x128x256xf32, #tpu.memory_space<vmem>>, vector<1x128x256xf32>
    %105 = vector.shape_cast %104 : vector<1x128x256xf32> to vector<128x256xf32>
    %cst_57 = arith.constant dense<0.000000e+00> : vector<32x256xf32>
    %106 = tpu.matmul %103, %105, %cst_57 {dimension_numbers = #tpu.dot_dimension_numbers<[1], [0], [0], [1], [0, 0, 1, 1], [], []>} : vector<32x128xf32>, vector<128x256xf32>, vector<32x256xf32> -> vector<32x256xf32>
    %107 = vector.extract_strided_slice %106 {offsets = [0, 128], sizes = [32, 128], strides = [1, 1]} : vector<32x256xf32> to vector<32x128xf32>
    %108 = arith.addf %67, %107 : vector<32x128xf32>
    %109 = vector.extract_strided_slice %106 {offsets = [0, 0], sizes = [32, 128], strides = [1, 1]} : vector<32x256xf32> to vector<32x128xf32>
    %110 = arith.addf %109, %103 : vector<32x128xf32>
    %c8_58 = arith.constant 8 : index
    %c0_59 = arith.constant 0 : index
    %111 = vector.load %arg10[%c8_58, %c0_59] : memref<40x128xf32, #tpu.memory_space<vmem>>, vector<32x128xf32>
    tpu.vector_store %arg10[%c8_58, %c0_59], %110 {strides = array<i32>} : memref<40x128xf32, #tpu.memory_space<vmem>>, vector<32x128xf32>,
    %c5_i32 = arith.constant 5 : i32
    %112 = vector.broadcast %c5_i32 : i32 to vector<32x1xi32>
    %113 = arith.cmpi sge, %16, %112 : vector<32x1xi32>
    %c3 = arith.constant 3 : index
    %c0_60 = arith.constant 0 : index
    %114 = vector.load %arg10[%c3, %c0_60] : memref<40x128xf32, #tpu.memory_space<vmem>>, vector<32x128xf32>
    %cst_61 = arith.constant 0.000000e+00 : f32
    %115 = vector.shape_cast %113 : vector<32x1xi1> to vector<32x1xi1>
    %116 = vector.broadcast %115 : vector<32x1xi1> to vector<32x128xi1>
    %117 = vector.broadcast %cst_61 : f32 to vector<32x128xf32>
    %118 = arith.select %116, %114, %117 : vector<32x128xi1>, vector<32x128xf32>
    %c7_62 = arith.constant 7 : index
    %c0_63 = arith.constant 0 : index
    %119 = vector.load %arg10[%c7_62, %c0_63] : memref<40x128xf32, #tpu.memory_space<vmem>>, vector<32x128xf32>
    %cst_64 = arith.constant 0.000000e+00 : f32
    %120 = vector.shape_cast %18 : vector<32x1xi1> to vector<32x1xi1>
    %121 = vector.broadcast %120 : vector<32x1xi1> to vector<32x128xi1>
    %122 = vector.broadcast %cst_64 : f32 to vector<32x128xf32>
    %123 = arith.select %121, %119, %122 : vector<32x128xi1>, vector<32x128xf32>
    %c2 = arith.constant 2 : index
    %c0_65 = arith.constant 0 : index
    %c0_66 = arith.constant 0 : index
    %124 = vector.load %arg5[%c2, %c0_65, %c0_66] : memref<3x128x256xf32, #tpu.memory_space<vmem>>, vector<1x128x256xf32>
    %125 = vector.shape_cast %124 : vector<1x128x256xf32> to vector<128x256xf32>
    %cst_67 = arith.constant dense<0.000000e+00> : vector<32x256xf32>
    %126 = tpu.matmul %118, %125, %cst_67 {dimension_numbers = #tpu.dot_dimension_numbers<[1], [0], [0], [1], [0, 0, 1, 1], [], []>} : vector<32x128xf32>, vector<128x256xf32>, vector<32x256xf32> -> vector<32x256xf32>
    %c2_68 = arith.constant 2 : index
    %c0_69 = arith.constant 0 : index
    %c0_70 = arith.constant 0 : index
    %127 = vector.load %arg6[%c2_68, %c0_69, %c0_70] : memref<3x128x256xf32, #tpu.memory_space<vmem>>, vector<1x128x256xf32>
    %128 = vector.shape_cast %127 : vector<1x128x256xf32> to vector<128x256xf32>
    %cst_71 = arith.constant dense<0.000000e+00> : vector<32x256xf32>
    %129 = tpu.matmul %123, %128, %cst_71 {dimension_numbers = #tpu.dot_dimension_numbers<[1], [0], [0], [1], [0, 0, 1, 1], [], []>} : vector<32x128xf32>, vector<128x256xf32>, vector<32x256xf32> -> vector<32x256xf32>
    %130 = arith.addf %126, %129 : vector<32x256xf32>
    %c2_72 = arith.constant 2 : index
    %c0_73 = arith.constant 0 : index
    %c0_74 = arith.constant 0 : index
    %131 = vector.load %arg7[%c2_72, %c0_73, %c0_74] : memref<3x1x256xf32, #tpu.memory_space<vmem>>, vector<1x1x256xf32>
    %132 = vector.shape_cast %131 : vector<1x1x256xf32> to vector<1x256xf32>
    %133 = vector.broadcast %19 : vector<32x1xf32> to vector<32x256xf32>
    %134 = vector.broadcast %132 : vector<1x256xf32> to vector<32x256xf32>
    %135 = arith.mulf %133, %134 : vector<32x256xf32>
    %136 = arith.addf %130, %135 : vector<32x256xf32>
    %137 = vector.extract_strided_slice %136 {offsets = [0, 0], sizes = [32, 128], strides = [1, 1]} : vector<32x256xf32> to vector<32x128xf32>
    %138 = vector.extract_strided_slice %136 {offsets = [0, 128], sizes = [32, 128], strides = [1, 1]} : vector<32x256xf32> to vector<32x128xf32>
    %139 = arith.negf %138 : vector<32x128xf32>
    %140 = math.exp %139 : vector<32x128xf32>
    %cst_75 = arith.constant 1.000000e+00 : f32
    %141 = vector.broadcast %cst_75 : f32 to vector<32x128xf32>
    %142 = arith.addf %141, %140 : vector<32x128xf32>
    %143 = arith.divf %141, %142 : vector<32x128xf32>
    %144 = arith.mulf %137, %143 : vector<32x128xf32>
    %c2_76 = arith.constant 2 : index
    %c0_77 = arith.constant 0 : index
    %c0_78 = arith.constant 0 : index
    %145 = vector.load %arg8[%c2_76, %c0_77, %c0_78] : memref<3x128x256xf32, #tpu.memory_space<vmem>>, vector<1x128x256xf32>
    %146 = vector.shape_cast %145 : vector<1x128x256xf32> to vector<128x256xf32>
    %cst_79 = arith.constant dense<0.000000e+00> : vector<32x256xf32>
    %147 = tpu.matmul %144, %146, %cst_79 {dimension_numbers = #tpu.dot_dimension_numbers<[1], [0], [0], [1], [0, 0, 1, 1], [], []>} : vector<32x128xf32>, vector<128x256xf32>, vector<32x256xf32> -> vector<32x256xf32>
    %148 = vector.extract_strided_slice %147 {offsets = [0, 128], sizes = [32, 128], strides = [1, 1]} : vector<32x256xf32> to vector<32x128xf32>
    %149 = arith.addf %108, %148 : vector<32x128xf32>
    %150 = vector.extract_strided_slice %147 {offsets = [0, 0], sizes = [32, 128], strides = [1, 1]} : vector<32x256xf32> to vector<32x128xf32>
    %151 = arith.addf %150, %144 : vector<32x128xf32>
    %c0_80 = arith.constant 0 : index
    %c0_81 = arith.constant 0 : index
    %152 = vector.load %arg9[%c0_80, %c0_81] : memref<32x256xf32, #tpu.memory_space<vmem>>, vector<32x128xf32>
    tpu.vector_store %arg9[%c0_80, %c0_81], %151 {strides = array<i32>} : memref<32x256xf32, #tpu.memory_space<vmem>>, vector<32x128xf32>,
    %c0_82 = arith.constant 0 : index
    %c128 = arith.constant 128 : index
    %153 = vector.load %arg9[%c0_82, %c128] : memref<32x256xf32, #tpu.memory_space<vmem>>, vector<32x128xf32>
    tpu.vector_store %arg9[%c0_82, %c128], %149 {strides = array<i32>} : memref<32x256xf32, #tpu.memory_space<vmem>>, vector<32x128xf32>,
    return
  }
  func.func @transform_0(%arg0: i32) -> (i32, i32) {
    %c0_i32 = arith.constant 0 : i32
    %c0_i32_0 = arith.constant 0 : i32
    return %arg0, %c0_i32 : i32, i32
  }
  func.func @transform_1(%arg0: i32) -> (i32, i32) {
    %c0_i32 = arith.constant 0 : i32
    %c0_i32_0 = arith.constant 0 : i32
    return %arg0, %c0_i32 : i32, i32
  }
  func.func @transform_2(%arg0: i32) -> (i32, i32) {
    %c0_i32 = arith.constant 0 : i32
    %c0_i32_0 = arith.constant 0 : i32
    %c0_i32_1 = arith.constant 0 : i32
    return %c0_i32, %c0_i32_0 : i32, i32
  }
  func.func @transform_3(%arg0: i32) -> (i32, i32) {
    %c0_i32 = arith.constant 0 : i32
    %c0_i32_0 = arith.constant 0 : i32
    %c0_i32_1 = arith.constant 0 : i32
    return %c0_i32, %c0_i32_0 : i32, i32
  }
  func.func @transform_4(%arg0: i32) -> (i32, i32, i32) {
    %c0_i32 = arith.constant 0 : i32
    %c0_i32_0 = arith.constant 0 : i32
    %c0_i32_1 = arith.constant 0 : i32
    %c0_i32_2 = arith.constant 0 : i32
    return %c0_i32, %c0_i32_0, %c0_i32_1 : i32, i32, i32
  }
  func.func @transform_5(%arg0: i32) -> (i32, i32, i32) {
    %c0_i32 = arith.constant 0 : i32
    %c0_i32_0 = arith.constant 0 : i32
    %c0_i32_1 = arith.constant 0 : i32
    %c0_i32_2 = arith.constant 0 : i32
    return %c0_i32, %c0_i32_0, %c0_i32_1 : i32, i32, i32
  }
  func.func @transform_6(%arg0: i32) -> (i32, i32, i32) {
    %c0_i32 = arith.constant 0 : i32
    %c0_i32_0 = arith.constant 0 : i32
    %c0_i32_1 = arith.constant 0 : i32
    %c0_i32_2 = arith.constant 0 : i32
    return %c0_i32, %c0_i32_0, %c0_i32_1 : i32, i32, i32
  }
  func.func @transform_7(%arg0: i32) -> (i32, i32, i32) {
    %c0_i32 = arith.constant 0 : i32
    %c0_i32_0 = arith.constant 0 : i32
    %c0_i32_1 = arith.constant 0 : i32
    %c0_i32_2 = arith.constant 0 : i32
    return %c0_i32, %c0_i32_0, %c0_i32_1 : i32, i32, i32
  }
  func.func @transform_8(%arg0: i32) -> (i32, i32) {
    %c0_i32 = arith.constant 0 : i32
    %c0_i32_0 = arith.constant 0 : i32
    return %arg0, %c0_i32 : i32, i32
  }
}

</mosaic_0001>

<bundles_post_ra>
// kernel: tpu_custom_call.1
= control target key start
LH: loop header
LB: loop body
LE: loop exit
PB: predicated region body
PF: predicated region fallthrough
CT: control target
= control target key end

     0   :  { %13 = vsyncpa [#allocation4], 0  ;;  %s2912_s0 = inlined_call_operand.vmem [shape: f32[64,4], index: 0, kind: input, shape index: {}]   ;;  %s2913_s1 = inlined_call_operand.vmem [shape: f32[64,1], index: 1, kind: input, shape index: {}]   ;;  %s2914_s2 = inlined_call_operand.vmem [shape: f32[4,128], index: 2, kind: input, shape index: {}]   ;;  %s2915_s3 = inlined_call_operand.vmem [shape: f32[1,128], index: 3, kind: input, shape index: {}]   ;;  %s2916_s4 = inlined_call_operand.hbm [shape: f32[3,128,256], index: 4, kind: input, shape index: {}]   ;;  %s2917_s5 = inlined_call_operand.hbm [shape: f32[3,128,256], index: 5, kind: input, shape index: {}]   ;;  %s2918_s6 = inlined_call_operand.vmem [shape: f32[3,1,256], index: 6, kind: input, shape index: {}]   ;;  %s2919_s7 = inlined_call_operand.hbm [shape: f32[3,128,256], index: 7, kind: input, shape index: {}]   ;;  %s2920_s8 = inlined_call_operand.hbm [shape: f32[64,256], index: 8, kind: output, shape index: {}]  }
   0x1   :  { %14 = vsyncpa [#allocation7], 0 }
   0x2   :  { %15 = vsyncpa [#allocation5], 0 }
   0x3   :  { %17 = vsyncpa [#allocation5 + $0x1], 0  ;;  %s2520_s27 = smov 0   ;;  %s2522_s28 = smov 0  }
   0x4   :  { %s2524_s29 = smov 0   ;;  %s2526_s30 = smov 0  }
   0x5 LB: > { %s2541_s9 = sadd.s32 4294967295, %s2463_s30   ;;  %s2090_s10 = sadd.s32 4294967294, %s2463_s30   ;;  %s2463_s30 = sphi %s2526_s30, %s2936_s30   ;;  %s2459_s29 = sphi %s2524_s29, %s2935_s29   ;;  %s2455_s28 = sphi %s2522_s28, %s2934_s28   ;;  %s2451_s27 = sphi %s2520_s27, %s2933_s27  }
   0x6   : > { %s2545_s11 = sadd.s32 1, %s2463_s30   ;;  %s208_s12 = sadd.s32 1, %s2459_s29 }
   0x7   : > { %s205_s13 = ssub.s32 %s2463_s30, %s2545_s11  ;;  %p218_p0 = scmp.ne.s32.totalorder %s2459_s29, %s2455_s28 }
   0x8   : > { %p206_p1 = scmp.eq.s32.totalorder %s205_s13, 0  ;;  %p219_p2 = scmp.eq.s32.totalorder %s2541_s9, 1 }
   0x9   : > { %p224_p3 = scmp.ne.s32.totalorder %s2455_s28, %s2451_s27  ;;  %p225_p4 = scmp.eq.s32.totalorder %s2090_s10, 1 }
   0xa   : > { %s2556_s14 = scalar_select %p206_p1, %s2459_s29, %s208_s12  }
   0xb   : > { %p2558_p5 = por %p219_p2, %p218_p0  ;;  %p2562_p6 = por %p225_p4, %p224_p3 }
   0xc   : > { %p2091_p7 = scmp.ge.s32.totalorder %s2463_s30, 1  ;;  %p232_p8 = scmp.lt.s32.totalorder %s2463_s30, 3 }
   0xd   : > { %s2923_s15 = scalar_select %p2558_p5, 1, 0 }
   0xe   : > { %s2924_s16 = scalar_select %p2562_p6, 1, 0 }
   0xf   : > { %p2921_p9 = scmp.eq.s32.totalorder %s2541_s9, 0  ;;  %p2569_p10 = pnand %p2091_p7, %p232_p8 }
  0x10   : > { %s2465_s18 = smov [#allocation6]   ;;  %s2466_s21 = smov [#allocation3]  }
  0x11   : > { %p2204_p11 = pneg %p2569_p10  ;;  %s263_s19 = sshll.u32 %s2465_s18, 4  ;;  %s264_s19 = int_to_ptr.vmem [resolvable:$true] %s263_s19 }
  0x12   : > { %s250_s22 = sshll.u32 %s2466_s21, 4  ;;  %s2467_s23 = smov [#allocation8]   ;;  %s251_s22 = int_to_ptr.vmem [resolvable:$true] %s250_s22 }
  0x13   : > { %p2577_p12 = pnand %p2921_p9, %p2204_p11  ;;  %s279_s24 = sshll.u32 %s2467_s23, 4  ;;  %s280_s24 = int_to_ptr.vmem [resolvable:$true] %s279_s24 }
  0x14   : > { %s2328_s25 = scalar_lea.vmem %s264_s19, 12288  ;;  %p2336_p3 = scmp.lt.s32.totalorder %s264_s19, %s264_s19 }
  0x15   : > { %p2319_p13 = pneg %p2577_p12  ;;  %p2329_p0 = scmp.ne.s32.totalorder %s264_s19, %s2328_s25 }
  0x16   : > { %p2337_p4 = scmp.lt.s32.totalorder %s2328_s25, %s2328_s25 }
  0x17   : > { %p2331_p1 = pnand %p2329_p0, %p2319_p13 }
  0x18   : > { %p2338_p7 = por %p2337_p4, %p2336_p3 }
  0x19   : > { %p2332_p2 = pneg %p2331_p1 }
  0x1b   : > { %p2339_p8 = pnand %p2338_p7, %p2332_p2 }
  0x1d   : > { %2342 = shalt.err (!%p2339_p8)
}
  0x1e   : > { %s2468_s26 = smov 256   ;;  %s2469_s10 = smov 16  }
  0x1f   : > { %2210 = dma.hbm_to_vmem [thread:$0]  (!%p2577_p12), %s2917_s5, 12288, %s264_s19, [#allocation7], %s2468_s26, %s2468_s26, %s2469_s10  }
  0x20   : > { %s2354_s18 = scalar_lea.vmem %s251_s22, 12288  ;;  %p2362_p9 = scmp.lt.s32.totalorder %s251_s22, %s251_s22 }
  0x21   : > { %p2355_p11 = scmp.ne.s32.totalorder %s251_s22, %s2354_s18  ;;  %p2363_p6 = scmp.lt.s32.totalorder %s2354_s18, %s2354_s18 }
  0x23   : > { %p2357_p0 = pnand %p2355_p11, %p2319_p13  ;;  %p2364_p3 = por %p2363_p6, %p2362_p9 }
  0x25   : > { %p2358_p1 = pneg %p2357_p0 }
  0x27   : > { %p2365_p2 = pnand %p2364_p3, %p2358_p1 }
  0x29   : > { %2368 = shalt.err (!%p2365_p2)
}
  0x2a   : > { %2207 = dma.hbm_to_vmem [thread:$0]  (!%p2577_p12), %s2916_s4, 12288, %s251_s22, [#allocation4], %s2468_s26, %s2468_s26, %s2469_s10  }
  0x2b   : > { %s2380_s19 = scalar_lea.vmem %s280_s24, 12288  ;;  %p2388_p11 = scmp.lt.s32.totalorder %s280_s24, %s280_s24 }
  0x2c   : > { %p2381_p4 = scmp.ne.s32.totalorder %s280_s24, %s2380_s19  ;;  %p2389_p0 = scmp.lt.s32.totalorder %s2380_s19, %s2380_s19 }
  0x2e   : > { %p2383_p7 = pnand %p2381_p4, %p2319_p13  ;;  %p2390_p5 = por %p2389_p0, %p2388_p11 }
  0x30   : > { %p2384_p8 = pneg %p2383_p7 }
  0x32   : > { %p2391_p6 = pnand %p2390_p5, %p2384_p8 }
  0x34   : > { %2394 = shalt.err (!%p2391_p6)
}
  0x35   : > { %2213 = dma.hbm_to_vmem [thread:$0]  (!%p2577_p12), %s2919_s7, 12288, %s280_s24, [#allocation7], %s2468_s26, %s2468_s26, %s2469_s10  }
  0x36   : > { %313 = sbr.rel (%p2569_p10) target bundleno = 1607 (0x647), region = 52  ;;  %p2927_p9 = scmp.eq.s32.totalorder (!%p2569_p10), %s2541_s9, 0 }
  0x3b   : > { %2438 = dma.done.wait (%p2927_p9), [#allocation4], 12288   ;;  %p2928_p13 = pmov %p2927_p9 }
  0x3c   : > { %p2929_p1 = pmov %p2927_p9 }
  0x3d   : > { %2440 = vsyncadd (%p2928_p13), [#allocation4], 4294955008 }
  0x3e   : > { %2442 = dma.done.wait (%p2929_p1), [#allocation7], 24576   ;;  %p2930_p5 = pmov %p2929_p1 }
  0x3f   : > { %s2101_s20 = sshll.u32 %s2541_s9, 2  ;;  %vm459_vm0 = vcmask 1043456   ;;  %vm446_vm1 = vcmask 31744   ;;  %v438_v0 = vld [vmem:[%s2914_s2] sm:$0xf]  ;;  %v651_v6 = vld [vmem:[#allocation6 + $0xf0] sm:$0xff] }
  0x40   : > { %2444 = vsyncadd (%p2930_p5), [#allocation7], 4294942720  ;;  %p361_p3 = scmp.lt.s32.totalorder %s2101_s20, 7  ;;  %2150 = vmatprep.subr.msk.mxu0 %vm459_vm0, %v438_v0  ;;  %v652_v4 = vld [vmem:[#allocation6 + $0xf8] sm:$0xff]  ;;  %v619_v7 = vld [vmem:[#allocation3 + $0xf0] sm:$0xff]  ;;  %v2470_v57 = vmov 0.0  }
  0x41   : > { %2151 = vmatpush3.msk.msra.mxu0 %vm459_vm0, %v438_v0  ;;  %653 = vmatprep.subr.mxu1 %v652_v4  ;;  %v620_v5 = vld [vmem:[#allocation3 + $0xf8] sm:$0xff]  ;;  %v650_v8 = vld [vmem:[#allocation6 + $0xe8] sm:$0xff]  ;;  %v649_v10 = vld [vmem:[#allocation6 + $0xe0] sm:$0xff]  ;;  %548 = vst [vmem:[#allocation2] sm:$0xff] %v2470_v57  ;;  %s357_s10 = sand.u32 1, %s2455_s28   ;;  %p2931_p12 = scmp.ne.s32.totalorder %s2923_s15, 0 }
  0x42   : > { %s2938_s20 = smov (!%p361_p3, %s2101_s20), 7  ;;  %742 = vmatprep.subr.mxu0 %v620_v5  ;;  %v618_v9 = vld [vmem:[#allocation3 + $0xe8] sm:$0xff]  ;;  %654 = vmatpush1.msra.mxu1 %v651_v6  ;;  %v648_v12 = vld [vmem:[#allocation6 + $0xd8] sm:$0xff]  ;;  %v617_v13 = vld [vmem:[#allocation3 + $0xe0] sm:$0xff]  ;;  %v2471_v6 = vmov 0   ;;  %s2100_s13 = sshll.u32 %s357_s10, 6 }
  0x43   : > { %s2102_s17 = sshll.u32 %s2938_s20, 3  ;;  %655 = vmatprep.subr.mxu1 %v650_v8  ;;  %v647_v14 = vld [vmem:[#allocation6 + $0xd0] sm:$0xff]  ;;  %v616_v15 = vld [vmem:[#allocation3 + $0xd8] sm:$0xff]  ;;  %v646_v16 = vld [vmem:[#allocation6 + $0xc8] sm:$0xff]  ;;  %717 = vmatprep.mubr.f32.mxu1 %v2470_v57  ;;  %s359_s18 = scalar_lea.vmem [#allocation9], %s2100_s13 }
  0x44   : > { %s364_s26 = scalar_lea.vmem %s2912_s0, %s2102_s17  ;;  %656 = vmatpush1.msra.mxu1 %v649_v10  ;;  %v615_v17 = vld [vmem:[#allocation3 + $0xd0] sm:$0xff]  ;;  %v645_v18 = vld [vmem:[#allocation6 + $0xc0] sm:$0xff]  ;;  %v614_v19 = vld [vmem:[#allocation3 + $0xc8] sm:$0xff]  ;;  %s370_s23 = scalar_lea.vmem %s2913_s1, %s2102_s17  ;;  %2266 = vset.pattern.permute.xlu0 %v2471_v6 }
  0x45   : > { %v434_v1 = vld [vmem:[%s364_s26] sm:$0xff]  ;;  %v435_v2 = vld [vmem:[%s364_s26 + $0x8] sm:$0xff]  ;;  %v436_v3 = vld [vmem:[%s364_s26 + $0x10] sm:$0xff]  ;;  %657 = vmatprep.subr.mxu1 %v648_v12  ;;  %2267 = vset.pattern.permute.xlu1 %v2471_v6  ;;  %v373_v12 = vlaneseq  ;;  %s1985_s21 = sshll.u32 %s359_s18, 4  ;;  %s2472_s17 = smov [#allocation9]   ;;  %s2863_s21 = int_to_ptr.vmem [resolvable:$true] %s1985_s21 }
  0x46   : > { %2152 = vmatprep.mubr.msk.f32.mxu0 %vm446_vm1, %v434_v1  ;;  %v437_v11 = vld [vmem:[%s364_s26 + $0x18] sm:$0xff]  ;;  %658 = vmatpush1.msra.mxu1 %v647_v14  ;;  %v644_v20 = vld [vmem:[#allocation6 + $0xb8] sm:$0xff]  ;;  %v613_v21 = vld [vmem:[#allocation3 + $0xc0] sm:$0xff]  ;;  %s2395_s20 = scalar_lea.vmem %s2863_s21, 1024  ;;  %s2399_s22 = sshll.u32 %s2472_s17, 4  ;;  %s2400_s22 = int_to_ptr.vmem [resolvable:$false] %s2399_s22 }
  0x47   : > { %2153 = vmatmul.mubr.msk.f32.vlgmr.msra.gmra.mxu0 %vm446_vm1, %v435_v2  ;;  %659 = vmatprep.subr.mxu1 %v646_v16  ;;  %v643_v22 = vld [vmem:[#allocation6 + $0xb0] sm:$0xff]  ;;  %v612_v23 = vld [vmem:[#allocation3 + $0xb8] sm:$0xff]  ;;  %v642_v24 = vld [vmem:[#allocation6 + $0xa8] sm:$0xff]  ;;  %v374_v16 = vshrl.u32 %v373_v12, 7  ;;  %p2396_p10 = scmp.ne.s32.totalorder %s2863_s21, %s2395_s20  ;;  %s2401_s24 = scalar_lea.vmem %s2400_s22, 2048 }
  0x48   : > { %2155 = vmatprep.mubr.msk.f32.mxu0 %vm446_vm1, %v436_v3  ;;  %743 = vmatpush1.msra.mxu0 %v619_v7  ;;  %v611_v25 = vld [vmem:[#allocation3 + $0xb0] sm:$0xff]  ;;  %v641_v26 = vld [vmem:[#allocation6 + $0xa0] sm:$0xff]  ;;  %v610_v27 = vld [vmem:[#allocation3 + $0xa8] sm:$0xff]  ;;  %p2402_p7 = scmp.lt.s32.totalorder %s2863_s21, %s2400_s22  ;;  %p2403_p8 = scmp.lt.s32.totalorder %s2401_s24, %s2395_s20 }
  0x49   : > { %744 = vmatprep.subr.mxu0 %v618_v9  ;;  %660 = vmatpush1.msra.mxu1 %v645_v18  ;;  %v640_v28 = vld [vmem:[#allocation6 + $0x98] sm:$0xff]  ;;  %v609_v29 = vld [vmem:[#allocation3 + $0xa0] sm:$0xff]  ;;  %v639_v30 = vld [vmem:[#allocation6 + $0x90] sm:$0xff]  ;;  %p2397_p2 = pnand %p2396_p10, %p2931_p12 }
  0x4a   : > { %745 = vmatpush1.msra.mxu0 %v617_v13  ;;  %661 = vmatprep.subr.mxu1 %v644_v20  ;;  %v608_v31 = vld [vmem:[#allocation3 + $0x98] sm:$0xff]  ;;  %v638_v32 = vld [vmem:[#allocation6 + $0x88] sm:$0xff]  ;;  %v607_v33 = vld [vmem:[#allocation3 + $0x90] sm:$0xff]  ;;  %p2404_p11 = por %p2403_p8, %p2402_p7 }
  0x4b   : > { %2156 = vmatmul.mubr.msk.f32.gmra.mxu0 %vm446_vm1, %v437_v11  ;;  %746 = vmatprep.subr.mxu0 %v616_v15  ;;  %v637_v34 = vld [vmem:[#allocation6 + $0x80] sm:$0xff]  ;;  %v606_v35 = vld [vmem:[#allocation3 + $0x88] sm:$0xff]  ;;  %v636_v36 = vld [vmem:[#allocation6 + $0x78] sm:$0xff]  ;;  %p2398_p4 = pneg %p2397_p2 }
  0x4c   : > { %747 = vmatpush1.msra.mxu0 %v615_v17  ;;  %662 = vmatpush1.msra.mxu1 %v643_v22  ;;  %v605_v37 = vld [vmem:[#allocation3 + $0x80] sm:$0xff]  ;;  %v635_v38 = vld [vmem:[#allocation6 + $0x70] sm:$0xff]  ;;  %v604_v39 = vld [vmem:[#allocation3 + $0x78] sm:$0xff] }
  0x4d   : > { %748 = vmatprep.subr.mxu0 %v614_v19  ;;  %663 = vmatprep.subr.mxu1 %v642_v24  ;;  %v634_v40 = vld [vmem:[#allocation6 + $0x68] sm:$0xff]  ;;  %v603_v41 = vld [vmem:[#allocation3 + $0x70] sm:$0xff]  ;;  %v633_v43 = vld [vmem:[#allocation6 + $0x60] sm:$0xff]  ;;  %p2405_p0 = pnand %p2404_p11, %p2398_p4 }
  0x4e   : > { %749 = vmatpush1.msra.mxu0 %v613_v21  ;;  %664 = vmatpush1.msra.mxu1 %v641_v26  ;;  %v602_v42 = vld [vmem:[#allocation3 + $0x68] sm:$0xff]  ;;  %v601_v44 = vld [vmem:[#allocation3 + $0x60] sm:$0xff]  ;;  %v632_v45 = vld [vmem:[#allocation6 + $0x58] sm:$0xff]  ;;  %v2652_v21 = vand.u32 15, %v374_v16 }
  0x4f   : > { %750 = vmatprep.subr.mxu0 %v612_v23  ;;  %665 = vmatprep.subr.mxu1 %v640_v28  ;;  %v600_v46 = vld [vmem:[#allocation3 + $0x58] sm:$0xff]  ;;  %v631_v47 = vld [vmem:[#allocation6 + $0x50] sm:$0xff]  ;;  %v630_v49 = vld [vmem:[#allocation6 + $0x48] sm:$0xff]  ;;  %v376_v23 = vadd.s32 16, %v374_v16 }
  0x50   : > { %751 = vmatpush1.msra.mxu0 %v611_v25  ;;  %666 = vmatpush1.msra.mxu1 %v639_v30  ;;  %v599_v48 = vld [vmem:[#allocation3 + $0x50] sm:$0xff]  ;;  %v598_v50 = vld [vmem:[#allocation3 + $0x48] sm:$0xff]  ;;  %v629_v51 = vld [vmem:[#allocation6 + $0x40] sm:$0xff]  ;;  %vm426_vm2 = vcmp.ge.s32.totalorder %v2652_v21, 1  ;;  %vm553_vm3 = vcmp.ge.s32.totalorder %v2652_v21, 2  ;;  %vm1040_vm6 = vcmp.ge.s32.totalorder %v2652_v21, 3 }
  0x51   : > { %752 = vmatprep.subr.mxu0 %v610_v27  ;;  %667 = vmatprep.subr.mxu1 %v638_v32  ;;  %v597_v52 = vld [vmem:[#allocation3 + $0x40] sm:$0xff]  ;;  %v628_v53 = vld [vmem:[#allocation6 + $0x38] sm:$0xff]  ;;  %v627_v55 = vld [vmem:[#allocation6 + $0x30] sm:$0xff]  ;;  %v2664_v26 = vand.u32 15, %v376_v23  ;;  %vm1503_vm8 = vcmp.ge.s32.totalorder %v2652_v21, 5 }
  0x52   : > { %753 = vmatpush1.msra.mxu0 %v609_v29  ;;  %668 = vmatpush1.msra.mxu1 %v637_v34  ;;  %v596_v54 = vld [vmem:[#allocation3 + $0x38] sm:$0xff]  ;;  %v595_v56 = vld [vmem:[#allocation3 + $0x30] sm:$0xff]  ;;  %v626_v58 = vld [vmem:[#allocation6 + $0x28] sm:$0xff]  ;;  %v2678_v34 = vsub.s32 0, %v374_v16 }
  0x53   : > { %754 = vmatprep.subr.mxu0 %v608_v31  ;;  %669 = vmatprep.subr.mxu1 %v636_v36  ;;  %v594_v59 = vld [vmem:[#allocation3 + $0x28] sm:$0xff]  ;;  %v625_v60 = vld [vmem:[#allocation6 + $0x20] sm:$0xff]  ;;  %v624_v62 = vld [vmem:[#allocation6 + $0x18] sm:$0xff]  ;;  %vm428_vm4 = vcmp.ge.s32.totalorder %v2664_v26, 1  ;;  %vm555_vm5 = vcmp.ge.s32.totalorder %v2664_v26, 2  ;;  %vm1042_vm7 = vcmp.ge.s32.totalorder %v2664_v26, 3 }
  0x54   : > { %755 = vmatpush1.msra.mxu0 %v607_v33  ;;  %670 = vmatpush1.msra.mxu1 %v635_v38  ;;  %v593_v61 = vld [vmem:[#allocation3 + $0x20] sm:$0xff]  ;;  %v592_v63 = vld [vmem:[#allocation3 + $0x18] sm:$0xff]  ;;  %v623_v0 = vld [vmem:[#allocation6 + $0x10] sm:$0xff]  ;;  %vm1505_vm9 = vcmp.ge.s32.totalorder %v2664_v26, 5 }
  0x55   : > { %756 = vmatprep.subr.mxu0 %v606_v35  ;;  %671 = vmatprep.subr.mxu1 %v634_v40  ;;  %v591_v1 = vld [vmem:[#allocation3 + $0x10] sm:$0xff]  ;;  %v622_v2 = vld [vmem:[#allocation6 + $0x8] sm:$0xff]  ;;  %v621_v4 = vld [vmem:[#allocation6] sm:$0xff]  ;;  %v2680_v35 = vsub.s32 1, %v374_v16 }
  0x56   : > { %757 = vmatpush1.msra.mxu0 %v605_v37  ;;  %672 = vmatpush1.msra.mxu1 %v633_v43  ;;  %v590_v3 = vld [vmem:[#allocation3 + $0x8] sm:$0xff]  ;;  %v589_v5 = vld [vmem:[#allocation3] sm:$0xff]  ;;  %v430_v7 = vld [vmem:[%s370_s23] sm:$0xff] }
  0x57   : > { %758 = vmatprep.subr.mxu0 %v604_v39  ;;  %673 = vmatprep.subr.mxu1 %v632_v45  ;;  %v432_v8 = vld [vmem:[%s370_s23 + $0x10] sm:$0xff]  ;;  %v431_v9 = vld [vmem:[%s370_s23 + $0x8] sm:$0xff]  ;;  %v433_v10 = vld [vmem:[%s370_s23 + $0x18] sm:$0xff]  ;;  %s2144_s23 = sshll.u32 %s2541_s9, 10  ;;  %s2872_s9 = scalar_lea.sflag [#allocation5], %s357_s10 }
  0x58   : > { %759 = vmatpush1.msra.mxu0 %v603_v41  ;;  %674 = vmatpush1.msra.mxu1 %v631_v47  ;;  %v2105_v11 = vld [vmem:[%s2915_s3] ss:$0 sm:$0xff]  ;;  %v2123_v36 = vld [vmem:[%s2918_s6 + $0x2] sm:$0x3]  ;;  %v2132_v37 = vld [vmem:[%s2918_s6 + $0x4] sm:$0x3]  ;;  %s2868_s12 = scalar_lea.hbm %s2920_s8, %s2144_s23 }
  0x59   : > { %760 = vmatprep.subr.mxu0 %v602_v42  ;;  %675 = vmatprep.subr.mxu1 %v630_v49  ;;  %v1318_v38 = vrot.slane %v2123_v36, %v2678_v34  ;;  %v1322_v39 = vrot.slane %v2123_v36, %v2680_v35  ;;  %v1781_v41 = vrot.slane %v2132_v37, %v2678_v34  ;;  %v930_v6 = vld [vmem:[#allocation8 + $0xb8] sm:$0xff]  ;;  %v924_v12 = vld [vmem:[#allocation8 + $0x88] sm:$0xff]  ;;  %v921_v16 = vld [vmem:[#allocation8 + $0x70] sm:$0xff] }
  0x5a   : > { %761 = vmatpush1.msra.mxu0 %v601_v44  ;;  %676 = vmatpush1.msra.mxu1 %v629_v51  ;;  %v1785_v42 = vrot.slane %v2132_v37, %v2680_v35  ;;  %v918_v23 = vld [vmem:[#allocation8 + $0x58] sm:$0xff]  ;;  %v909_v36 = vld [vmem:[#allocation8 + $0x10] sm:$0xff]  ;;  %v908_v37 = vld [vmem:[#allocation8 + $0x8] sm:$0xff] }
  0x5b   : > { %762 = vmatprep.subr.mxu0 %v600_v46  ;;  %677 = vmatprep.subr.mxu1 %v628_v53  ;;  %v937_v53 = vld [vmem:[#allocation8 + $0xf0] sm:$0xff]  ;;  %v1862_v26 = vld [vmem:[#allocation8 + $0x2e8] sm:$0xff] }
  0x5c   : > { %763 = vmatpush1.msra.mxu0 %v599_v48  ;;  %678 = vmatpush1.msra.mxu1 %v627_v55  ;;  %v936_v55 = vld [vmem:[#allocation8 + $0xe8] sm:$0xff] }
  0x5d   : > { %764 = vmatprep.subr.mxu0 %v598_v50  ;;  %679 = vmatprep.subr.mxu1 %v626_v58 }
  0x5e   : > { %765 = vmatpush1.msra.mxu0 %v597_v52  ;;  %680 = vmatpush1.msra.mxu1 %v625_v60  ;;  %v938_v52 = vld [vmem:[#allocation8 + $0xf8] sm:$0xff] }
  0x5f   : > { %766 = vmatprep.subr.mxu0 %v596_v54  ;;  %681 = vmatprep.subr.mxu1 %v624_v62 }
  0x60   : > { %767 = vmatpush1.msra.mxu0 %v595_v56  ;;  %682 = vmatpush1.msra.mxu1 %v623_v0  ;;  %v935_v56 = vld [vmem:[#allocation8 + $0xe0] sm:$0xff]  ;;  %v933_v0 = vld [vmem:[#allocation8 + $0xd0] sm:$0xff] }
  0x61   : > { %768 = vmatprep.subr.mxu0 %v594_v59  ;;  %683 = vmatprep.subr.mxu1 %v622_v2  ;;  %v934_v59 = vld [vmem:[#allocation8 + $0xd8] sm:$0xff] }
  0x62   : > { %769 = vmatpush1.msra.mxu0 %v593_v61  ;;  %684 = vmatpush1.msra.mxu1 %v621_v4  ;;  %v932_v4 = vld [vmem:[#allocation8 + $0xc8] sm:$0xff] }
  0x63   : > { %770 = vmatprep.subr.mxu0 %v592_v63  ;;  %806 = vmatprep.mubr.f32.mxu0 %v2470_v57 }
  0x64   : > { %771 = vmatpush1.msra.mxu0 %v591_v1  ;;  %834 = vperm.xlu0 %2266, %v430_v7   ;;  %v929_v7 = vld [vmem:[#allocation8 + $0xb0] sm:$0xff] }
  0x65   : > { %772 = vmatprep.subr.mxu0 %v590_v3  ;;  %844 = vperm.xlu1 %2267, %v432_v8   ;;  %v928_v8 = vld [vmem:[#allocation8 + $0xa8] sm:$0xff] }
  0x66   : > { %773 = vmatpush1.msra.mxu0 %v589_v5  ;;  %939 = vmatprep.subr.mxu1 %v938_v52  ;;  %v931_v5 = vld [vmem:[#allocation8 + $0xc0] sm:$0xff]  ;;  %v1131_v52 = vld [vmem:[#allocation6 + $0x1e8] sm:$0xff] }
  0x68   : > { %839 = vperm.xlu0 %2266, %v431_v9   ;;  %v927_v9 = vld [vmem:[#allocation8 + $0xa0] sm:$0xff] }
  0x69   : > { %849 = vperm.xlu1 %2267, %v433_v10   ;;  %v926_v10 = vld [vmem:[#allocation8 + $0x98] sm:$0xff] }
  0xdf   : > { %v2676_v33 = vpop.permute.xlu0 %834 }
  0xe0   : > { %v2695_v43 = vmul.f32 %v1318_v38, %v2676_v33  ;;  %v2698_v44 = vmul.f32 %v1322_v39, %v2676_v33  ;;  %v2707_v47 = vmul.f32 %v1781_v41, %v2676_v33  ;;  %v2710_v48 = vmul.f32 %v1785_v42, %v2676_v33  ;;  %v2718_v51 = vpop.permute.xlu1 %844 }
  0xe1   : > { %v2723_v58 = vmul.f32 %v1318_v38, %v2718_v51  ;;  %v2726_v60 = vmul.f32 %v1322_v39, %v2718_v51  ;;  %v2735_v63 = vmul.f32 %v1781_v41, %v2718_v51  ;;  %v2738_v1 = vmul.f32 %v1785_v42, %v2718_v51 }
  0xe3   : > { %v2690_v40 = vpop.permute.xlu0 %839 }
  0xe4   : > { %v2701_v45 = vmul.f32 %v1318_v38, %v2690_v40  ;;  %v2704_v46 = vmul.f32 %v1322_v39, %v2690_v40  ;;  %v2713_v49 = vmul.f32 %v1781_v41, %v2690_v40  ;;  %v2716_v50 = vmul.f32 %v1785_v42, %v2690_v40  ;;  %v2720_v54 = vpop.permute.xlu1 %849 }
  0xe5   : > { %v2729_v61 = vmul.f32 %v1318_v38, %v2720_v54  ;;  %v2732_v62 = vmul.f32 %v1322_v39, %v2720_v54  ;;  %v2741_v2 = vmul.f32 %v1781_v41, %v2720_v54  ;;  %v2744_v3 = vmul.f32 %v1785_v42, %v2720_v54  ;;  %v907_v38 = vld [vmem:[#allocation8] sm:$0xff]  ;;  %v1133_v39 = vld [vmem:[#allocation6 + $0x1f8] sm:$0xff]  ;;  %v1132_v42 = vld [vmem:[#allocation6 + $0x1f0] sm:$0xff] }
  0xe6   : > { %v1100_v41 = vld [vmem:[#allocation3 + $0x1f8] sm:$0xff]  ;;  %1134 = vmatprep.subr.mxu0 %v1133_v39 }
 0x107   : > { %v2154_v13 = vpop.f32.mrf.mxu0 }
 0x108   : > { %v2644_v14 = vadd.f32 %v2154_v13, %v2105_v11  ;;  %v923_v13 = vld [vmem:[#allocation8 + $0x80] sm:$0xff] }
 0x109   : > { %v529_v15 = vpop.f32.mrf.mxu0 }
 0x10a   : > { %550 = vst [vmem:[#allocation2 + $0x10] sm:$0xff] %v2644_v14  ;;  %v2647_v17 = vadd.f32 %v2105_v11, %v529_v15  ;;  %v922_v15 = vld [vmem:[#allocation8 + $0x78] sm:$0xff] }
 0x10b   : > { %v2157_v18 = vpop.f32.mrf.mxu0 }
 0x10c   : > { %549 = vst [vmem:[#allocation2 + $0x8] sm:$0xff] %v2647_v17  ;;  %v2650_v19 = vadd.f32 %v2157_v18, %v2105_v11  ;;  %v920_v18 = vld [vmem:[#allocation8 + $0x68] sm:$0xff] }
 0x10d   : > { %v539_v20 = vpop.f32.mrf.mxu0 }
 0x10e   : > { %552 = vst [vmem:[#allocation2 + $0x20] sm:$0xff] %v2650_v19  ;;  %v2655_v22 = vadd.f32 %v2105_v11, %v539_v20  ;;  %v925_v11 = vld [vmem:[#allocation8 + $0x90] sm:$0xff]  ;;  %v919_v20 = vld [vmem:[#allocation8 + $0x60] sm:$0xff] }
 0x110   : > { %551 = vst [vmem:[#allocation2 + $0x18] sm:$0xff] %v2655_v22 }
 0x113   : > { %v573_v24 = vld [vmem:[#allocation2 + $0x7] sm:$0xff]  ;;  %v574_v27 = vld [vmem:[#allocation2 + $0xf] sm:$0xff] }
 0x114   : > { %v557_v25 = vld [vmem:[#allocation2 + $0x6] sm:$0xff]  ;;  %2111 = vmatmul.mubr.msk.f32.vlgmr.msra.gmra.mxu1 %vm426_vm2, %v573_v24  ;;  %v558_v28 = vld [vmem:[#allocation2 + $0xe] sm:$0xff]  ;;  %v917_v24 = vld [vmem:[#allocation8 + $0x50] sm:$0xff] }
 0x115   : > { %2113 = vmatmul.mubr.msk.f32.vlgmr.msra.gmra.mxu0 %vm553_vm3, %v557_v25  ;;  %723 = vmatprep.mubr.f32.mxu1 %v2470_v57  ;;  %v916_v25 = vld [vmem:[#allocation8 + $0x48] sm:$0xff] }
 0x116   : > { %812 = vmatprep.mubr.f32.mxu0 %v2470_v57  ;;  %940 = vmatpush1.msra.mxu1 %v937_v53  ;;  %v1130_v53 = vld [vmem:[#allocation6 + $0x1e0] sm:$0xff] }
 0x117   : > { %v575_v29 = vld [vmem:[#allocation2 + $0x17] sm:$0xff]  ;;  %v576_v31 = vld [vmem:[#allocation2 + $0x1f] sm:$0xff]  ;;  %941 = vmatprep.subr.mxu1 %v936_v55  ;;  %1135 = vmatpush1.msra.mxu0 %v1132_v42 }
 0x118   : > { %724 = vmatmul.mubr.f32.gmra.mxu1 %v574_v27  ;;  %v559_v30 = vld [vmem:[#allocation2 + $0x16] sm:$0xff]  ;;  %v560_v32 = vld [vmem:[#allocation2 + $0x1e] sm:$0xff]  ;;  %v915_v27 = vld [vmem:[#allocation8 + $0x40] sm:$0xff]  ;;  %1136 = vmatprep.subr.mxu0 %v1131_v52 }
 0x119   : > { %813 = vmatmul.mubr.f32.gmra.mxu0 %v558_v28  ;;  %729 = vmatprep.mubr.f32.mxu1 %v2470_v57  ;;  %v914_v28 = vld [vmem:[#allocation8 + $0x38] sm:$0xff] }
 0x11a   : > { %818 = vmatprep.mubr.f32.mxu0 %v2470_v57  ;;  %942 = vmatpush1.msra.mxu1 %v935_v56  ;;  %v1129_v55 = vld [vmem:[#allocation6 + $0x1d8] sm:$0xff]  ;;  %v1128_v56 = vld [vmem:[#allocation6 + $0x1d0] sm:$0xff] }
 0x11b   : > { %943 = vmatprep.subr.mxu1 %v934_v59  ;;  %1137 = vmatpush1.msra.mxu0 %v1130_v53  ;;  %v1127_v59 = vld [vmem:[#allocation6 + $0x1c8] sm:$0xff] }
 0x11c   : > { %2112 = vmatmul.mubr.msk.f32.gmra.mxu1 %vm428_vm4, %v575_v29  ;;  %v913_v29 = vld [vmem:[#allocation8 + $0x30] sm:$0xff]  ;;  %1138 = vmatprep.subr.mxu0 %v1129_v55 }
 0x11d   : > { %2114 = vmatmul.mubr.msk.f32.gmra.mxu0 %vm555_vm5, %v559_v30  ;;  %735 = vmatprep.mubr.f32.mxu1 %v2470_v57  ;;  %v912_v30 = vld [vmem:[#allocation8 + $0x28] sm:$0xff] }
 0x11e   : > { %824 = vmatprep.mubr.f32.mxu0 %v2470_v57  ;;  %944 = vmatpush1.msra.mxu1 %v933_v0  ;;  %v1126_v0 = vld [vmem:[#allocation6 + $0x1c0] sm:$0xff] }
 0x11f   : > { %945 = vmatprep.subr.mxu1 %v932_v4  ;;  %1139 = vmatpush1.msra.mxu0 %v1128_v56  ;;  %v1125_v4 = vld [vmem:[#allocation6 + $0x1b8] sm:$0xff] }
 0x120   : > { %736 = vmatmul.mubr.f32.gmra.mxu1 %v576_v31  ;;  %v911_v31 = vld [vmem:[#allocation8 + $0x20] sm:$0xff]  ;;  %1140 = vmatprep.subr.mxu0 %v1127_v59 }
 0x121   : > { %825 = vmatmul.mubr.f32.gmra.mxu0 %v560_v32  ;;  %1003 = vmatprep.mubr.f32.mxu1 %v2470_v57  ;;  %v910_v32 = vld [vmem:[#allocation8 + $0x18] sm:$0xff] }
 0x122   : > { %1198 = vmatprep.mubr.f32.mxu0 %v2470_v57  ;;  %946 = vmatpush1.msra.mxu1 %v931_v5  ;;  %v1124_v5 = vld [vmem:[#allocation6 + $0x1b0] sm:$0xff] }
 0x123   : > { %947 = vmatprep.subr.mxu1 %v930_v6  ;;  %1141 = vmatpush1.msra.mxu0 %v1126_v0  ;;  %v1123_v6 = vld [vmem:[#allocation6 + $0x1a8] sm:$0xff] }
 0x124   : > { %948 = vmatpush1.msra.mxu1 %v929_v7  ;;  %1142 = vmatprep.subr.mxu0 %v1125_v4  ;;  %v1122_v7 = vld [vmem:[#allocation6 + $0x1a0] sm:$0xff] }
 0x125   : > { %949 = vmatprep.subr.mxu1 %v928_v8  ;;  %1143 = vmatpush1.msra.mxu0 %v1124_v5  ;;  %v1121_v8 = vld [vmem:[#allocation6 + $0x198] sm:$0xff] }
 0x126   : > { %950 = vmatpush1.msra.mxu1 %v927_v9  ;;  %1144 = vmatprep.subr.mxu0 %v1123_v6  ;;  %v1120_v9 = vld [vmem:[#allocation6 + $0x190] sm:$0xff] }
 0x127   : > { %951 = vmatprep.subr.mxu1 %v926_v10  ;;  %1145 = vmatpush1.msra.mxu0 %v1122_v7  ;;  %v1119_v10 = vld [vmem:[#allocation6 + $0x188] sm:$0xff] }
 0x128   : > { %952 = vmatpush1.msra.mxu1 %v925_v11  ;;  %1146 = vmatprep.subr.mxu0 %v1121_v8  ;;  %v1118_v11 = vld [vmem:[#allocation6 + $0x180] sm:$0xff] }
 0x129   : > { %953 = vmatprep.subr.mxu1 %v924_v12  ;;  %1147 = vmatpush1.msra.mxu0 %v1120_v9  ;;  %v1117_v12 = vld [vmem:[#allocation6 + $0x178] sm:$0xff] }
 0x12a   : > { %954 = vmatpush1.msra.mxu1 %v923_v13  ;;  %1148 = vmatprep.subr.mxu0 %v1119_v10  ;;  %v1116_v13 = vld [vmem:[#allocation6 + $0x170] sm:$0xff] }
 0x12b   : > { %955 = vmatprep.subr.mxu1 %v922_v15  ;;  %1149 = vmatpush1.msra.mxu0 %v1118_v11  ;;  %v1115_v15 = vld [vmem:[#allocation6 + $0x168] sm:$0xff] }
 0x12c   : > { %956 = vmatpush1.msra.mxu1 %v921_v16  ;;  %1150 = vmatprep.subr.mxu0 %v1117_v12  ;;  %v1114_v16 = vld [vmem:[#allocation6 + $0x160] sm:$0xff] }
 0x12d   : > { %957 = vmatprep.subr.mxu1 %v920_v18  ;;  %1151 = vmatpush1.msra.mxu0 %v1116_v13  ;;  %v1113_v18 = vld [vmem:[#allocation6 + $0x158] sm:$0xff] }
 0x12e   : > { %958 = vmatpush1.msra.mxu1 %v919_v20  ;;  %1152 = vmatprep.subr.mxu0 %v1115_v15  ;;  %v831_v20 = vld [vmem:[%s2918_s6] sm:$0x3] }
 0x12f   : > { %959 = vmatprep.subr.mxu1 %v918_v23  ;;  %1153 = vmatpush1.msra.mxu0 %v1114_v16  ;;  %v860_v23 = vrot.slane %v831_v20, %v2680_v35 }
 0x130   : > { %960 = vmatpush1.msra.mxu1 %v917_v24  ;;  %1154 = vmatprep.subr.mxu0 %v1113_v18 }
 0x131   : > { %961 = vmatprep.subr.mxu1 %v916_v25  ;;  %v866_v42 = vmul.f32 %v860_v23, %v2690_v40  ;;  %v868_v55 = vmul.f32 %v860_v23, %v2718_v51  ;;  %v870_v12 = vmul.f32 %v860_v23, %v2720_v54 }
 0x132   : > { %962 = vmatpush1.msra.mxu1 %v915_v27  ;;  %v864_v27 = vmul.f32 %v860_v23, %v2676_v33 }
 0x133   : > { %963 = vmatprep.subr.mxu1 %v914_v28 }
 0x134   : > { %964 = vmatpush1.msra.mxu1 %v913_v29 }
 0x135   : > { %965 = vmatprep.subr.mxu1 %v912_v30 }
 0x136   : > { %966 = vmatpush1.msra.mxu1 %v911_v31 }
 0x137   : > { %967 = vmatprep.subr.mxu1 %v910_v32 }
 0x138   : > { %968 = vmatpush1.msra.mxu1 %v909_v36 }
 0x139   : > { %969 = vmatprep.subr.mxu1 %v908_v37 }
 0x13a   : > { %970 = vmatpush1.msra.mxu1 %v907_v38 }
 0x13b   : > { %1223 = vmatprep.subr.mxu1 %v1100_v41 }
 0x1d4   : > { %v719_v24 = vpop.f32.mrf.mxu1 }
 0x1d5   : > { %v808_v25 = vpop.f32.mrf.mxu0 }
 0x1d6   : > { %v721_v28 = vpop.f32.mrf.mxu1 }
 0x1d7   : > { %v810_v29 = vpop.f32.mrf.mxu0 }
 0x1d8   : > { %v811_v30 = vadd.f32 %v810_v29, %v721_v28  ;;  %v725_v31 = vpop.f32.mrf.mxu1  ;;  %v856_v29 = vrot.slane %v831_v20, %v2678_v34 }
 0x1d9   : > { %v814_v32 = vpop.f32.mrf.mxu0 }
 0x1da   : > { %v872_v36 = vadd.f32 %v864_v27, %v811_v30  ;;  %v727_v37 = vpop.f32.mrf.mxu1  ;;  %v867_v20 = vmul.f32 %v856_v29, %v2718_v51  ;;  %v1092_v51 = vld [vmem:[#allocation3 + $0x1b8] sm:$0xff] }
 0x1db   : > { %v816_v38 = vpop.f32.mrf.mxu0 }
 0x1dc   : > { %v2115_v39 = vmul.f32 -1.442695, %v872_v36  ;;  %v817_v41 = vadd.f32 %v816_v38, %v727_v37  ;;  %v731_v52 = vpop.f32.mrf.mxu1  ;;  %v809_v37 = vadd.f32 %v808_v25, %v719_v24  ;;  %v863_v38 = vmul.f32 %v856_v29, %v2676_v33  ;;  %v1097_v24 = vld [vmem:[#allocation3 + $0x1e0] sm:$0xff]  ;;  %v1096_v33 = vld [vmem:[#allocation3 + $0x1d8] sm:$0xff] }
 0x1dd   : > { %v820_v53 = vpop.f32.mrf.mxu0 }
 0x1de   : > { %2268 = vpow2.f32 %v2115_v39  ;;  %v874_v35 = vadd.f32 %v866_v42, %v817_v41  ;;  %v733_v56 = vpop.f32.mrf.mxu1  ;;  %v871_v41 = vadd.f32 %v863_v38, %v809_v37  ;;  %v815_v42 = vadd.f32 %v814_v32, %v725_v31  ;;  %v1095_v31 = vld [vmem:[#allocation3 + $0x1d0] sm:$0xff]  ;;  %v1094_v32 = vld [vmem:[#allocation3 + $0x1c8] sm:$0xff]  ;;  %v1080_v37 = vld [vmem:[#allocation3 + $0x158] sm:$0xff] }
 0x1df   : > { %v822_v59 = vpop.f32.mrf.mxu0  ;;  %v821_v34 = vadd.f32 %v820_v53, %v731_v52  ;;  %v869_v53 = vmul.f32 %v856_v29, %v2720_v54  ;;  %v1085_v54 = vld [vmem:[#allocation3 + $0x180] sm:$0xff]  ;;  %v1112_v38 = vld [vmem:[#allocation6 + $0x150] sm:$0xff] }
 0x1e0   : > { %v2116_v0 = vmul.f32 -1.442695, %v874_v35  ;;  %v823_v4 = vadd.f32 %v822_v59, %v733_v56  ;;  %v737_v5 = vpop.f32.mrf.mxu1  ;;  %v1099_v59 = vld [vmem:[#allocation3 + $0x1f0] sm:$0xff]  ;;  %1155 = vmatpush1.msra.mxu0 %v1112_v38  ;;  %v1397_v38 = vld [vmem:[#allocation8 + $0x1d8] sm:$0xff] }
 0x1e1   : > { %v826_v6 = vpop.f32.mrf.mxu0 }
 0x1e2   : > { %2270 = vpow2.f32 %v2116_v0  ;;  %v876_v7 = vadd.f32 %v868_v55, %v823_v4  ;;  %v739_v8 = vpop.f32.mrf.mxu1  ;;  %v865_v55 = vmul.f32 %v856_v29, %v2690_v40  ;;  %v1098_v0 = vld [vmem:[#allocation3 + $0x1e8] sm:$0xff]  ;;  %v875_v40 = vadd.f32 %v867_v20, %v821_v34  ;;  %v1083_v29 = vld [vmem:[#allocation3 + $0x170] sm:$0xff]  ;;  %v1106_v20 = vld [vmem:[#allocation6 + $0x120] sm:$0xff] }
 0x1e3   : > { %v828_v9 = vpop.f32.mrf.mxu0  ;;  %v1074_v34 = vld [vmem:[#allocation3 + $0x128] sm:$0xff] }
 0x1e4   : > { %v2117_v10 = vmul.f32 -1.442695, %v876_v7  ;;  %v829_v11 = vadd.f32 %v828_v9, %v739_v8  ;;  %v873_v4 = vadd.f32 %v865_v55, %v815_v42  ;;  %v827_v8 = vadd.f32 %v826_v6, %v737_v5  ;;  %v1093_v9 = vld [vmem:[#allocation3 + $0x1c0] sm:$0xff]  ;;  %v1088_v6 = vld [vmem:[#allocation3 + $0x198] sm:$0xff] }
 0x1e5   : > { %v1110_v42 = vld [vmem:[#allocation6 + $0x140] sm:$0xff]  ;;  %v1109_v55 = vld [vmem:[#allocation6 + $0x138] sm:$0xff] }
 0x1e6   : > { %2272 = vpow2.f32 %v2117_v10  ;;  %v878_v13 = vadd.f32 %v870_v12, %v829_v11  ;;  %v1091_v11 = vld [vmem:[#allocation3 + $0x1b0] sm:$0xff]  ;;  %v1090_v12 = vld [vmem:[#allocation3 + $0x1a8] sm:$0xff] }
 0x1e8   : > { %v2118_v15 = vmul.f32 -1.442695, %v878_v13  ;;  %v877_v13 = vadd.f32 %v869_v53, %v827_v8  ;;  %v1102_v8 = vld [vmem:[#allocation6 + $0x100] sm:$0xff] }
 0x1ea   : > { %2274 = vpow2.f32 %v2118_v15  ;;  %v1089_v15 = vld [vmem:[#allocation3 + $0x1a0] sm:$0xff] }
 0x1eb   : > { %v2269_v16 = vpop.eup %2268 }
 0x1ec   : > { %v891_v18 = vadd.f32 1.0, %v2269_v16 }
 0x1ee   : > { %2276 = vrcp.f32 %v891_v18  ;;  %v1087_v18 = vld [vmem:[#allocation3 + $0x190] sm:$0xff] }
 0x1ef   : > { %v2271_v27 = vpop.eup %2270 }
 0x1f0   : > { %v892_v28 = vadd.f32 1.0, %v2271_v27  ;;  %v1086_v27 = vld [vmem:[#allocation3 + $0x188] sm:$0xff] }
 0x1f2   : > { %2278 = vrcp.f32 %v892_v28  ;;  %v1084_v28 = vld [vmem:[#allocation3 + $0x178] sm:$0xff] }
 0x1f3   : > { %v2273_v30 = vpop.eup %2272 }
 0x1f4   : > { %v893_v36 = vadd.f32 1.0, %v2273_v30  ;;  %v1082_v30 = vld [vmem:[#allocation3 + $0x168] sm:$0xff] }
 0x1f6   : > { %2280 = vrcp.f32 %v893_v36  ;;  %v1081_v36 = vld [vmem:[#allocation3 + $0x160] sm:$0xff] }
 0x1f7   : > { %v2275_v39 = vpop.eup %2274 }
 0x1f8   : > { %v894_v23 = vadd.f32 1.0, %v2275_v39  ;;  %v1079_v39 = vld [vmem:[#allocation3 + $0x150] sm:$0xff] }
 0x1fa   : > { %2282 = vrcp.f32 %v894_v23  ;;  %v1111_v23 = vld [vmem:[#allocation6 + $0x148] sm:$0xff] }
 0x1fb   : > { %v2277_v35 = vpop.eup %2276  ;;  %1156 = vmatprep.subr.mxu0 %v1111_v23  ;;  %v1395_v23 = vld [vmem:[#allocation8 + $0x1c8] sm:$0xff] }
 0x1fc   : > { %v903_v56 = vmul.f32 %v2277_v35, %v871_v41  ;;  %v1078_v41 = vld [vmem:[#allocation3 + $0x148] sm:$0xff]  ;;  %v1077_v35 = vld [vmem:[#allocation3 + $0x140] sm:$0xff]  ;;  %1157 = vmatpush1.msra.mxu0 %v1110_v42  ;;  %v1393_v42 = vld [vmem:[#allocation8 + $0x1b8] sm:$0xff] }
 0x1fd   : > { %1158 = vmatprep.subr.mxu0 %v1109_v55  ;;  %v1390_v55 = vld [vmem:[#allocation8 + $0x1a0] sm:$0xff] }
 0x1fe   : > { %1004 = vmatmul.mubr.f32.vlgmr.msra.gmra.mxu1 %v903_v56  ;;  %v1076_v56 = vld [vmem:[#allocation3 + $0x138] sm:$0xff] }
 0x1ff   : > { %v2279_v25 = vpop.eup %2278  ;;  %1009 = vmatprep.mubr.f32.mxu1 %v2470_v57  ;;  %1224 = vmatpush1.msra.mxu1 %v1099_v59  ;;  %v1108_v59 = vld [vmem:[#allocation6 + $0x130] sm:$0xff] }
 0x200   : > { %v904_v7 = vmul.f32 %v2279_v25, %v873_v4  ;;  %1225 = vmatprep.subr.mxu1 %v1098_v0  ;;  %v1075_v0 = vld [vmem:[#allocation3 + $0x130] sm:$0xff]  ;;  %1159 = vmatpush1.msra.mxu0 %v1108_v59  ;;  %v1107_v4 = vld [vmem:[#allocation6 + $0x128] sm:$0xff]  ;;  %v1105_v25 = vld [vmem:[#allocation6 + $0x118] sm:$0xff] }
 0x201   : > { %1226 = vmatpush1.msra.mxu1 %v1097_v24  ;;  %1160 = vmatprep.subr.mxu0 %v1107_v4  ;;  %v1073_v24 = vld [vmem:[#allocation3 + $0x120] sm:$0xff]  ;;  %v1388_v59 = vld [vmem:[#allocation8 + $0x190] sm:$0xff] }
 0x202   : > { %1010 = vmatmul.mubr.f32.gmra.mxu1 %v904_v7  ;;  %1227 = vmatprep.subr.mxu1 %v1096_v33  ;;  %v1072_v33 = vld [vmem:[#allocation3 + $0x118] sm:$0xff]  ;;  %v1104_v7 = vld [vmem:[#allocation6 + $0x110] sm:$0xff]  ;;  %v1386_v4 = vld [vmem:[#allocation8 + $0x180] sm:$0xff] }
 0x203   : > { %v2281_v52 = vpop.eup %2280  ;;  %1015 = vmatprep.mubr.f32.mxu1 %v2470_v57  ;;  %1228 = vmatpush1.msra.mxu1 %v1095_v31  ;;  %v1071_v31 = vld [vmem:[#allocation3 + $0x110] sm:$0xff] }
 0x204   : > { %v905_v10 = vmul.f32 %v2281_v52, %v875_v40  ;;  %1229 = vmatprep.subr.mxu1 %v1094_v32  ;;  %1161 = vmatpush1.msra.mxu0 %v1106_v20  ;;  %v1103_v32 = vld [vmem:[#allocation6 + $0x108] sm:$0xff]  ;;  %v1384_v20 = vld [vmem:[#allocation8 + $0x170] sm:$0xff] }
 0x205   : > { %1230 = vmatpush1.msra.mxu1 %v1093_v9  ;;  %1162 = vmatprep.subr.mxu0 %v1105_v25  ;;  %v1070_v40 = vld [vmem:[#allocation3 + $0x108] sm:$0xff]  ;;  %v1069_v9 = vld [vmem:[#allocation3 + $0x100] sm:$0xff] }
 0x206   : > { %1016 = vmatmul.mubr.f32.gmra.mxu1 %v905_v10  ;;  %1231 = vmatprep.subr.mxu1 %v1092_v51  ;;  %v1382_v25 = vld [vmem:[#allocation8 + $0x160] sm:$0xff] }
 0x207   : > { %v2283_v5 = vpop.eup %2282  ;;  %1021 = vmatprep.mubr.f32.mxu1 %v2470_v57  ;;  %1232 = vmatpush1.msra.mxu1 %v1091_v11 }
 0x208   : > { %v906_v16 = vmul.f32 %v2283_v5, %v877_v13  ;;  %1233 = vmatprep.subr.mxu1 %v1090_v12  ;;  %1163 = vmatpush1.msra.mxu0 %v1104_v7  ;;  %v1380_v7 = vld [vmem:[#allocation8 + $0x150] sm:$0xff] }
 0x209   : > { %1234 = vmatpush1.msra.mxu1 %v1089_v15  ;;  %1164 = vmatprep.subr.mxu0 %v1103_v32  ;;  %v1378_v32 = vld [vmem:[#allocation8 + $0x140] sm:$0xff] }
 0x20a   : > { %1022 = vmatmul.mubr.f32.gmra.mxu1 %v906_v16  ;;  %1235 = vmatprep.subr.mxu1 %v1088_v6 }
 0x20b   : > { %1236 = vmatpush1.msra.mxu1 %v1087_v18  ;;  %1287 = vmatprep.mubr.f32.mxu1 %v2470_v57 }
 0x20c   : > { %1237 = vmatprep.subr.mxu1 %v1086_v27  ;;  %1165 = vmatpush1.msra.mxu0 %v1102_v8  ;;  %v1376_v8 = vld [vmem:[#allocation8 + $0x130] sm:$0xff] }
 0x20d   : > { %1238 = vmatpush1.msra.mxu1 %v1085_v54 }
 0x20e   : > { %1239 = vmatprep.subr.mxu1 %v1084_v28 }
 0x20f   : > { %1240 = vmatpush1.msra.mxu1 %v1083_v29  ;;  %v1401_v29 = vld [vmem:[#allocation8 + $0x1f8] sm:$0xff] }
 0x210   : > { %1241 = vmatprep.subr.mxu1 %v1082_v30  ;;  %1402 = vmatprep.subr.mxu0 %v1401_v29  ;;  %v1400_v30 = vld [vmem:[#allocation8 + $0x1f0] sm:$0xff]  ;;  %v1586_v29 = vld [vmem:[#allocation6 + $0x2a8] sm:$0xff] }
 0x211   : > { %1242 = vmatpush1.msra.mxu1 %v1081_v36  ;;  %v1399_v36 = vld [vmem:[#allocation8 + $0x1e8] sm:$0xff] }
 0x212   : > { %1243 = vmatprep.subr.mxu1 %v1080_v37  ;;  %v1398_v37 = vld [vmem:[#allocation8 + $0x1e0] sm:$0xff] }
 0x213   : > { %1244 = vmatpush1.msra.mxu1 %v1079_v39  ;;  %v1396_v39 = vld [vmem:[#allocation8 + $0x1d0] sm:$0xff] }
 0x214   : > { %1245 = vmatprep.subr.mxu1 %v1078_v41  ;;  %v1394_v41 = vld [vmem:[#allocation8 + $0x1c0] sm:$0xff] }
 0x215   : > { %1246 = vmatpush1.msra.mxu1 %v1077_v35  ;;  %v1392_v35 = vld [vmem:[#allocation8 + $0x1b0] sm:$0xff] }
 0x216   : > { %1247 = vmatprep.subr.mxu1 %v1076_v56  ;;  %v1389_v56 = vld [vmem:[#allocation8 + $0x198] sm:$0xff] }
 0x217   : > { %1248 = vmatpush1.msra.mxu1 %v1075_v0  ;;  %v1387_v0 = vld [vmem:[#allocation8 + $0x188] sm:$0xff] }
 0x218   : > { %1249 = vmatprep.subr.mxu1 %v1074_v34  ;;  %v1385_v34 = vld [vmem:[#allocation8 + $0x178] sm:$0xff] }
 0x219   : > { %1250 = vmatpush1.msra.mxu1 %v1073_v24  ;;  %v1383_v24 = vld [vmem:[#allocation8 + $0x168] sm:$0xff] }
 0x21a   : > { %1251 = vmatprep.subr.mxu1 %v1072_v33  ;;  %v1381_v33 = vld [vmem:[#allocation8 + $0x158] sm:$0xff] }
 0x21b   : > { %1252 = vmatpush1.msra.mxu1 %v1071_v31  ;;  %v1379_v31 = vld [vmem:[#allocation8 + $0x148] sm:$0xff] }
 0x21c   : > { %1253 = vmatprep.subr.mxu1 %v1070_v40  ;;  %v1377_v40 = vld [vmem:[#allocation8 + $0x138] sm:$0xff] }
 0x21d   : > { %1254 = vmatpush1.msra.mxu1 %v1069_v9  ;;  %v1375_v9 = vld [vmem:[#allocation8 + $0x128] sm:$0xff] }
 0x2be   : > { %v1005_v52 = vpop.f32.mrf.mxu1 }
 0x2bf   : > { %v1032_v51 = vadd.f32 %v1005_v52, %v2647_v17  ;;  %v1374_v52 = vld [vmem:[#allocation8 + $0x120] sm:$0xff] }
 0x2c0   : > { %v2764_v53 = vpop.f32.mrf.mxu1 }
 0x2c1   : > { %1036 = vst [vmem:[#allocation2 + $0x8] sm:$0xff] %v1032_v51  ;;  %v1373_v51 = vld [vmem:[#allocation8 + $0x118] sm:$0xff] }
 0x2c2   : > { %v1011_v10 = vpop.f32.mrf.mxu1 }
 0x2c3   : > { %v1033_v11 = vadd.f32 %v1011_v10, %v2644_v14  ;;  %v1372_v10 = vld [vmem:[#allocation8 + $0x110] sm:$0xff] }
 0x2c4   : > { %v2767_v12 = vpop.f32.mrf.mxu1 }
 0x2c5   : > { %1037 = vst [vmem:[#allocation2 + $0x10] sm:$0xff] %v1033_v11  ;;  %v1371_v11 = vld [vmem:[#allocation8 + $0x108] sm:$0xff] }
 0x2c6   : > { %v1017_v13 = vpop.f32.mrf.mxu1 }
 0x2c7   : > { %v1034_v15 = vadd.f32 %v1017_v13, %v2655_v22  ;;  %v1370_v13 = vld [vmem:[#allocation8 + $0x100] sm:$0xff] }
 0x2c8   : > { %v2771_v5 = vpop.f32.mrf.mxu1  ;;  %v1060_v6 = vld [vmem:[#allocation2 + $0x7] sm:$0xff] }
 0x2c9   : > { %v1044_v16 = vld [vmem:[#allocation2 + $0x5] sm:$0xff]  ;;  %1038 = vst [vmem:[#allocation2 + $0x18] sm:$0xff] %v1034_v15  ;;  %2119 = vmatmul.mubr.msk.f32.vlgmr.msra.gmra.mxu0 %vm426_vm2, %v1060_v6 }
 0x2ca   : > { %2121 = vmatmul.mubr.msk.f32.vlgmr.msra.gmra.mxu1 %vm1040_vm6, %v1044_v16  ;;  %v1023_v17 = vpop.f32.mrf.mxu1  ;;  %1204 = vmatprep.mubr.f32.mxu0 %v2470_v57  ;;  %v1596_v15 = vld [vmem:[#allocation6 + $0x2f8] sm:$0xff]  ;;  %v1595_v16 = vld [vmem:[#allocation6 + $0x2f0] sm:$0xff] }
 0x2cb   : > { %1293 = vmatprep.mubr.f32.mxu1 %v2470_v57  ;;  %v1035_v14 = vadd.f32 %v1023_v17, %v2650_v19  ;;  %1403 = vmatpush1.msra.mxu0 %v1400_v30  ;;  %v1563_v6 = vld [vmem:[#allocation3 + $0x2f8] sm:$0xff]  ;;  %v1594_v17 = vld [vmem:[#allocation6 + $0x2e8] sm:$0xff]  ;;  %v1585_v30 = vld [vmem:[#allocation6 + $0x2a0] sm:$0xff] }
 0x2cc   : > { %v1061_v18 = vld [vmem:[#allocation2 + $0xf] sm:$0xff]  ;;  %1404 = vmatprep.subr.mxu0 %v1399_v36  ;;  %1597 = vmatprep.subr.mxu1 %v1596_v15  ;;  %v1584_v36 = vld [vmem:[#allocation6 + $0x298] sm:$0xff] }
 0x2cd   : > { %v1045_v27 = vld [vmem:[#allocation2 + $0xd] sm:$0xff]  ;;  %1039 = vst [vmem:[#allocation2 + $0x20] sm:$0xff] %v1035_v14  ;;  %1205 = vmatmul.mubr.f32.gmra.mxu0 %v1061_v18  ;;  %1598 = vmatpush1.msra.mxu1 %v1595_v16  ;;  %v1592_v18 = vld [vmem:[#allocation6 + $0x2d8] sm:$0xff] }
 0x2ce   : > { %1294 = vmatmul.mubr.f32.gmra.mxu1 %v1045_v27  ;;  %1210 = vmatprep.mubr.f32.mxu0 %v2470_v57  ;;  %v1593_v14 = vld [vmem:[#allocation6 + $0x2e0] sm:$0xff]  ;;  %v1591_v27 = vld [vmem:[#allocation6 + $0x2d0] sm:$0xff] }
 0x2cf   : > { %1299 = vmatprep.mubr.f32.mxu1 %v2470_v57  ;;  %1405 = vmatpush1.msra.mxu0 %v1398_v37  ;;  %v1583_v37 = vld [vmem:[#allocation6 + $0x290] sm:$0xff] }
 0x2d0   : > { %v1062_v22 = vld [vmem:[#allocation2 + $0x17] sm:$0xff]  ;;  %1406 = vmatprep.subr.mxu0 %v1397_v38  ;;  %1599 = vmatprep.subr.mxu1 %v1594_v17 }
 0x2d1   : > { %v1046_v54 = vld [vmem:[#allocation2 + $0x15] sm:$0xff]  ;;  %2120 = vmatmul.mubr.msk.f32.gmra.mxu0 %vm428_vm4, %v1062_v22  ;;  %1600 = vmatpush1.msra.mxu1 %v1593_v14 }
 0x2d2   : > { %2122 = vmatmul.mubr.msk.f32.gmra.mxu1 %vm1042_vm7, %v1046_v54  ;;  %1216 = vmatprep.mubr.f32.mxu0 %v2470_v57  ;;  %v1590_v22 = vld [vmem:[#allocation6 + $0x2c8] sm:$0xff]  ;;  %v1589_v54 = vld [vmem:[#allocation6 + $0x2c0] sm:$0xff] }
 0x2d3   : > { %1305 = vmatprep.mubr.f32.mxu1 %v2470_v57  ;;  %1407 = vmatpush1.msra.mxu0 %v1396_v39  ;;  %v1582_v38 = vld [vmem:[#allocation6 + $0x288] sm:$0xff]  ;;  %v1581_v39 = vld [vmem:[#allocation6 + $0x280] sm:$0xff] }
 0x2d4   : > { %v1063_v19 = vld [vmem:[#allocation2 + $0x1f] sm:$0xff]  ;;  %1408 = vmatprep.subr.mxu0 %v1395_v23  ;;  %1601 = vmatprep.subr.mxu1 %v1592_v18 }
 0x2d5   : > { %v1047_v28 = vld [vmem:[#allocation2 + $0x1d] sm:$0xff]  ;;  %1217 = vmatmul.mubr.f32.gmra.mxu0 %v1063_v19  ;;  %1602 = vmatpush1.msra.mxu1 %v1591_v27 }
 0x2d6   : > { %1306 = vmatmul.mubr.f32.gmra.mxu1 %v1047_v28  ;;  %1466 = vmatprep.mubr.f32.mxu0 %v2470_v57  ;;  %v1588_v19 = vld [vmem:[#allocation6 + $0x2b8] sm:$0xff]  ;;  %v1587_v28 = vld [vmem:[#allocation6 + $0x2b0] sm:$0xff] }
 0x2d7   : > { %1661 = vmatprep.mubr.f32.mxu1 %v2470_v57  ;;  %1409 = vmatpush1.msra.mxu0 %v1394_v41  ;;  %v1391_v57 = vld [vmem:[#allocation8 + $0x1a8] sm:$0xff]  ;;  %v1580_v23 = vld [vmem:[#allocation6 + $0x278] sm:$0xff]  ;;  %v1579_v41 = vld [vmem:[#allocation6 + $0x270] sm:$0xff] }
 0x2d8   : > { %1410 = vmatprep.subr.mxu0 %v1393_v42  ;;  %1603 = vmatprep.subr.mxu1 %v1590_v22  ;;  %v1578_v42 = vld [vmem:[#allocation6 + $0x268] sm:$0xff] }
 0x2d9   : > { %1411 = vmatpush1.msra.mxu0 %v1392_v35  ;;  %1604 = vmatpush1.msra.mxu1 %v1589_v54  ;;  %v1577_v35 = vld [vmem:[#allocation6 + $0x260] sm:$0xff] }
 0x2da   : > { %1412 = vmatprep.subr.mxu0 %v1391_v57  ;;  %1605 = vmatprep.subr.mxu1 %v1588_v19  ;;  %v1576_v57 = vld [vmem:[#allocation6 + $0x258] sm:$0xff] }
 0x2db   : > { %1413 = vmatpush1.msra.mxu0 %v1390_v55  ;;  %1606 = vmatpush1.msra.mxu1 %v1587_v28  ;;  %v2787_v55 = vpop.f32.mrf.mxu1 }
 0x2dc   : > { %1414 = vmatprep.subr.mxu0 %v1389_v56  ;;  %1607 = vmatprep.subr.mxu1 %v1586_v29 }
 0x2dd   : > { %1415 = vmatpush1.msra.mxu0 %v1388_v59  ;;  %1608 = vmatpush1.msra.mxu1 %v1585_v30 }
 0x2de   : > { %1416 = vmatprep.subr.mxu0 %v1387_v0  ;;  %1609 = vmatprep.subr.mxu1 %v1584_v36 }
 0x2df   : > { %1417 = vmatpush1.msra.mxu0 %v1386_v4  ;;  %1610 = vmatpush1.msra.mxu1 %v1583_v37 }
 0x2e0   : > { %1418 = vmatprep.subr.mxu0 %v1385_v34  ;;  %1611 = vmatprep.subr.mxu1 %v1582_v38 }
 0x2e1   : > { %1419 = vmatpush1.msra.mxu0 %v1384_v20  ;;  %1612 = vmatpush1.msra.mxu1 %v1581_v39 }
 0x2e2   : > { %1420 = vmatprep.subr.mxu0 %v1383_v24  ;;  %1613 = vmatprep.subr.mxu1 %v1580_v23  ;;  %v1562_v23 = vld [vmem:[#allocation3 + $0x2f0] sm:$0xff] }
 0x2e3   : > { %1421 = vmatpush1.msra.mxu0 %v1382_v25  ;;  %1614 = vmatpush1.msra.mxu1 %v1579_v41  ;;  %v1561_v41 = vld [vmem:[#allocation3 + $0x2e8] sm:$0xff] }
 0x2e4   : > { %1422 = vmatprep.subr.mxu0 %v1381_v33  ;;  %1615 = vmatprep.subr.mxu1 %v1578_v42 }
 0x2e5   : > { %1423 = vmatpush1.msra.mxu0 %v1380_v7  ;;  %1616 = vmatpush1.msra.mxu1 %v1577_v35 }
 0x2e6   : > { %1424 = vmatprep.subr.mxu0 %v1379_v31  ;;  %1617 = vmatprep.subr.mxu1 %v1576_v57  ;;  %v1560_v57 = vld [vmem:[#allocation3 + $0x2e0] sm:$0xff] }
 0x2e7   : > { %1425 = vmatpush1.msra.mxu0 %v1378_v32 }
 0x2e8   : > { %1426 = vmatprep.subr.mxu0 %v1377_v40 }
 0x2e9   : > { %1427 = vmatpush1.msra.mxu0 %v1376_v8 }
 0x2ea   : > { %1428 = vmatprep.subr.mxu0 %v1375_v9 }
 0x2eb   : > { %1429 = vmatpush1.msra.mxu0 %v1374_v52 }
 0x2ec   : > { %1430 = vmatprep.subr.mxu0 %v1373_v51 }
 0x2ed   : > { %1431 = vmatpush1.msra.mxu0 %v1372_v10 }
 0x2ee   : > { %1432 = vmatprep.subr.mxu0 %v1371_v11 }
 0x2ef   : > { %1433 = vmatpush1.msra.mxu0 %v1370_v13 }
 0x2f0   : > { %1686 = vmatprep.subr.mxu0 %v1563_v6 }
 0x389   : > { %v1200_v56 = vpop.f32.mrf.mxu0 }
 0x38a   : > { %v1289_v59 = vpop.f32.mrf.mxu1 }
 0x38b   : > { %v1202_v0 = vpop.f32.mrf.mxu0  ;;  %v1290_v30 = vadd.f32 %v1289_v59, %v1200_v56  ;;  %v2798_v56 = vld [vmem:[#allocation2] sm:$0xff] }
 0x38c   : > { %v1291_v4 = vpop.f32.mrf.mxu1 }
 0x38d   : > { %v1292_v34 = vadd.f32 %v1291_v4, %v1202_v0  ;;  %v1206_v20 = vpop.f32.mrf.mxu0  ;;  %v1333_v37 = vadd.f32 %v2695_v43, %v1290_v30  ;;  %v1559_v43 = vld [vmem:[#allocation3 + $0x2d8] sm:$0xff]  ;;  %v1558_v4 = vld [vmem:[#allocation3 + $0x2d0] sm:$0xff]  ;;  %v1537_v30 = vld [vmem:[#allocation3 + $0x228] sm:$0xff] }
 0x38e   : > { %v1295_v24 = vpop.f32.mrf.mxu1 }
 0x38f   : > { %v1334_v25 = vadd.f32 %v2698_v44, %v1292_v34  ;;  %v1208_v33 = vpop.f32.mrf.mxu0  ;;  %v1296_v38 = vadd.f32 %v1295_v24, %v1206_v20  ;;  %v1557_v34 = vld [vmem:[#allocation3 + $0x2c8] sm:$0xff]  ;;  %v1556_v24 = vld [vmem:[#allocation3 + $0x2c0] sm:$0xff] }
 0x390   : > { %v1297_v7 = vpop.f32.mrf.mxu1 }
 0x391   : > { %v2124_v31 = vmul.f32 -1.442695, %v1334_v25  ;;  %v1298_v32 = vadd.f32 %v1297_v7, %v1208_v33  ;;  %v1212_v40 = vpop.f32.mrf.mxu0  ;;  %v1335_v42 = vadd.f32 %v2701_v45, %v1296_v38  ;;  %v1555_v33 = vld [vmem:[#allocation3 + $0x2b8] sm:$0xff] }
 0x392   : > { %v1301_v8 = vpop.f32.mrf.mxu1  ;;  %v1535_v38 = vld [vmem:[#allocation3 + $0x218] sm:$0xff] }
 0x393   : > { %2284 = vpow2.f32 %v2124_v31  ;;  %v1336_v9 = vadd.f32 %v2704_v46, %v1298_v32  ;;  %v1214_v52 = vpop.f32.mrf.mxu0  ;;  %v1302_v35 = vadd.f32 %v1301_v8, %v1212_v40  ;;  %v1554_v31 = vld [vmem:[#allocation3 + $0x2b0] sm:$0xff]  ;;  %v1553_v32 = vld [vmem:[#allocation3 + $0x2a8] sm:$0xff] }
 0x394   : > { %v1303_v51 = vpop.f32.mrf.mxu1 }
 0x395   : > { %v2125_v10 = vmul.f32 -1.442695, %v1336_v9  ;;  %v1304_v11 = vadd.f32 %v1303_v51, %v1214_v52  ;;  %v1218_v13 = vpop.f32.mrf.mxu0  ;;  %v1337_v20 = vadd.f32 %v2723_v58, %v1302_v35  ;;  %v1552_v58 = vld [vmem:[#allocation3 + $0x2a0] sm:$0xff]  ;;  %v1551_v9 = vld [vmem:[#allocation3 + $0x298] sm:$0xff]  ;;  %v1550_v51 = vld [vmem:[#allocation3 + $0x290] sm:$0xff] }
 0x396   : > { %v1307_v15 = vpop.f32.mrf.mxu1  ;;  %v1565_v35 = vld [vmem:[#allocation6 + $0x200] sm:$0xff] }
 0x397   : > { %2286 = vpow2.f32 %v2125_v10  ;;  %v1338_v6 = vadd.f32 %v2726_v60, %v1304_v11  ;;  %v1220_v16 = vpop.f32.mrf.mxu0  ;;  %v1308_v45 = vadd.f32 %v1307_v15, %v1218_v13  ;;  %v1549_v10 = vld [vmem:[#allocation3 + $0x288] sm:$0xff]  ;;  %v1548_v11 = vld [vmem:[#allocation3 + $0x280] sm:$0xff]  ;;  %v1546_v13 = vld [vmem:[#allocation3 + $0x270] sm:$0xff] }
 0x398   : > { %v1309_v44 = vpop.f32.mrf.mxu1  ;;  %v1545_v15 = vld [vmem:[#allocation3 + $0x268] sm:$0xff] }
 0x399   : > { %v2126_v17 = vmul.f32 -1.442695, %v1338_v6  ;;  %v1310_v14 = vadd.f32 %v1309_v44, %v1220_v16  ;;  %v1339_v40 = vadd.f32 %v2729_v61, %v1308_v45  ;;  %v1547_v61 = vld [vmem:[#allocation3 + $0x278] sm:$0xff]  ;;  %v1544_v6 = vld [vmem:[#allocation3 + $0x260] sm:$0xff]  ;;  %v1575_v44 = vld [vmem:[#allocation6 + $0x250] sm:$0xff] }
 0x39a   : > { %v1543_v16 = vld [vmem:[#allocation3 + $0x258] sm:$0xff]  ;;  %1618 = vmatpush1.msra.mxu1 %v1575_v44  ;;  %v1854_v44 = vld [vmem:[#allocation8 + $0x2a8] sm:$0xff] }
 0x39b   : > { %2288 = vpow2.f32 %v2126_v17  ;;  %v1340_v18 = vadd.f32 %v2732_v62, %v1310_v14  ;;  %v1542_v17 = vld [vmem:[#allocation3 + $0x250] sm:$0xff]  ;;  %v1574_v14 = vld [vmem:[#allocation6 + $0x248] sm:$0xff] }
 0x39c   : > { %1619 = vmatprep.subr.mxu1 %v1574_v14  ;;  %v1852_v14 = vld [vmem:[#allocation8 + $0x298] sm:$0xff] }
 0x39d   : > { %v2127_v27 = vmul.f32 -1.442695, %v1340_v18  ;;  %v1541_v18 = vld [vmem:[#allocation3 + $0x248] sm:$0xff] }
 0x39f   : > { %2290 = vpow2.f32 %v2127_v27  ;;  %v1573_v27 = vld [vmem:[#allocation6 + $0x240] sm:$0xff] }
 0x3a0   : > { %v2285_v22 = vpop.eup %2284  ;;  %1620 = vmatpush1.msra.mxu1 %v1573_v27  ;;  %v1850_v27 = vld [vmem:[#allocation8 + $0x288] sm:$0xff] }
 0x3a1   : > { %v1353_v46 = vadd.f32 1.0, %v2285_v22  ;;  %v1540_v22 = vld [vmem:[#allocation3 + $0x240] sm:$0xff] }
 0x3a3   : > { %2292 = vrcp.f32 %v1353_v46  ;;  %v1572_v46 = vld [vmem:[#allocation6 + $0x238] sm:$0xff] }
 0x3a4   : > { %v2287_v54 = vpop.eup %2286  ;;  %1621 = vmatprep.subr.mxu1 %v1572_v46  ;;  %v1848_v46 = vld [vmem:[#allocation8 + $0x278] sm:$0xff] }
 0x3a5   : > { %v1354_v19 = vadd.f32 1.0, %v2287_v54  ;;  %v1539_v54 = vld [vmem:[#allocation3 + $0x238] sm:$0xff] }
 0x3a7   : > { %2294 = vrcp.f32 %v1354_v19  ;;  %v1571_v19 = vld [vmem:[#allocation6 + $0x230] sm:$0xff] }
 0x3a8   : > { %v2289_v28 = vpop.eup %2288  ;;  %1622 = vmatpush1.msra.mxu1 %v1571_v19  ;;  %v1846_v19 = vld [vmem:[#allocation8 + $0x268] sm:$0xff] }
 0x3a9   : > { %v1355_v29 = vadd.f32 1.0, %v2289_v28  ;;  %v1538_v28 = vld [vmem:[#allocation3 + $0x230] sm:$0xff] }
 0x3ab   : > { %2296 = vrcp.f32 %v1355_v29  ;;  %v1570_v29 = vld [vmem:[#allocation6 + $0x228] sm:$0xff] }
 0x3ac   : > { %v2291_v60 = vpop.eup %2290  ;;  %1623 = vmatprep.subr.mxu1 %v1570_v29  ;;  %v1844_v29 = vld [vmem:[#allocation8 + $0x258] sm:$0xff] }
 0x3ad   : > { %v1356_v36 = vadd.f32 1.0, %v2291_v60  ;;  %v1569_v60 = vld [vmem:[#allocation6 + $0x220] sm:$0xff] }
 0x3ae   : > { %1624 = vmatpush1.msra.mxu1 %v1569_v60  ;;  %v1842_v60 = vld [vmem:[#allocation8 + $0x248] sm:$0xff] }
 0x3af   : > { %2298 = vrcp.f32 %v1356_v36  ;;  %v1536_v36 = vld [vmem:[#allocation3 + $0x220] sm:$0xff] }
 0x3b0   : > { %v2293_v39 = vpop.eup %2292 }
 0x3b1   : > { %v2794_v62 = vmul.f32 %v2293_v39, %v1333_v37  ;;  %v1568_v37 = vld [vmem:[#allocation6 + $0x218] sm:$0xff]  ;;  %v1567_v39 = vld [vmem:[#allocation6 + $0x210] sm:$0xff] }
 0x3b2   : > { %1625 = vmatprep.subr.mxu1 %v1568_v37  ;;  %v1840_v37 = vld [vmem:[#allocation8 + $0x238] sm:$0xff] }
 0x3b3   : > { %1467 = vmatmul.mubr.f32.vlgmr.msra.gmra.mxu0 %v2794_v62  ;;  %1626 = vmatpush1.msra.mxu1 %v1567_v39  ;;  %v1838_v39 = vld [vmem:[#allocation8 + $0x228] sm:$0xff] }
 0x3b4   : > { %v2295_v0 = vpop.eup %2294  ;;  %1472 = vmatprep.mubr.f32.mxu0 %v2798_v56  ;;  %1687 = vmatpush1.msra.mxu0 %v1562_v23  ;;  %v1534_v23 = vld [vmem:[#allocation3 + $0x210] sm:$0xff] }
 0x3b5   : > { %v2801_v59 = vmul.f32 %v2295_v0, %v1335_v42  ;;  %1688 = vmatprep.subr.mxu0 %v1561_v41  ;;  %v1566_v41 = vld [vmem:[#allocation6 + $0x208] sm:$0xff] }
 0x3b6   : > { %1689 = vmatpush1.msra.mxu0 %v1560_v57  ;;  %v1533_v42 = vld [vmem:[#allocation3 + $0x208] sm:$0xff]  ;;  %1627 = vmatprep.subr.mxu1 %v1566_v41  ;;  %v1532_v57 = vld [vmem:[#allocation3 + $0x200] sm:$0xff]  ;;  %v1836_v41 = vld [vmem:[#allocation8 + $0x218] sm:$0xff] }
 0x3b7   : > { %1473 = vmatmul.mubr.f32.gmra.mxu0 %v2801_v59  ;;  %1690 = vmatprep.subr.mxu0 %v1559_v43 }
 0x3b8   : > { %v2297_v25 = vpop.eup %2296  ;;  %1478 = vmatprep.mubr.f32.mxu0 %v2798_v56  ;;  %1691 = vmatpush1.msra.mxu0 %v1558_v4 }
 0x3b9   : > { %v2806_v7 = vmul.f32 %v2297_v25, %v1337_v20  ;;  %1692 = vmatprep.subr.mxu0 %v1557_v34  ;;  %1628 = vmatpush1.msra.mxu1 %v1565_v35  ;;  %v1834_v35 = vld [vmem:[#allocation8 + $0x208] sm:$0xff] }
 0x3ba   : > { %1693 = vmatpush1.msra.mxu0 %v1556_v24 }
 0x3bb   : > { %1479 = vmatmul.mubr.f32.gmra.mxu0 %v2806_v7  ;;  %1694 = vmatprep.subr.mxu0 %v1555_v33 }
 0x3bc   : > { %v2299_v8 = vpop.eup %2298  ;;  %1484 = vmatprep.mubr.f32.mxu0 %v2798_v56  ;;  %1695 = vmatpush1.msra.mxu0 %v1554_v31 }
 0x3bd   : > { %v2811_v52 = vmul.f32 %v2299_v8, %v1339_v40  ;;  %1696 = vmatprep.subr.mxu0 %v1553_v32 }
 0x3be   : > { %1697 = vmatpush1.msra.mxu0 %v1552_v58 }
 0x3bf   : > { %1485 = vmatmul.mubr.f32.gmra.mxu0 %v2811_v52  ;;  %1698 = vmatprep.subr.mxu0 %v1551_v9 }
 0x3c0   : > { %1699 = vmatpush1.msra.mxu0 %v1550_v51  ;;  %1750 = vmatprep.mubr.f32.mxu0 %v2798_v56  ;;  %v1863_v51 = vld [vmem:[#allocation8 + $0x2f0] sm:$0xff] }
 0x3c1   : > { %1700 = vmatprep.subr.mxu0 %v1549_v10  ;;  %v1861_v10 = vld [vmem:[#allocation8 + $0x2e0] sm:$0xff] }
 0x3c2   : > { %1701 = vmatpush1.msra.mxu0 %v1548_v11  ;;  %v1860_v11 = vld [vmem:[#allocation8 + $0x2d8] sm:$0xff] }
 0x3c3   : > { %1702 = vmatprep.subr.mxu0 %v1547_v61  ;;  %v1859_v61 = vld [vmem:[#allocation8 + $0x2d0] sm:$0xff] }
 0x3c4   : > { %1703 = vmatpush1.msra.mxu0 %v1546_v13  ;;  %v1858_v13 = vld [vmem:[#allocation8 + $0x2c8] sm:$0xff] }
 0x3c5   : > { %1704 = vmatprep.subr.mxu0 %v1545_v15  ;;  %v1857_v15 = vld [vmem:[#allocation8 + $0x2c0] sm:$0xff] }
 0x3c6   : > { %1705 = vmatpush1.msra.mxu0 %v1544_v6  ;;  %v1856_v6 = vld [vmem:[#allocation8 + $0x2b8] sm:$0xff] }
 0x3c7   : > { %1706 = vmatprep.subr.mxu0 %v1543_v16  ;;  %v1855_v16 = vld [vmem:[#allocation8 + $0x2b0] sm:$0xff] }
 0x3c8   : > { %1707 = vmatpush1.msra.mxu0 %v1542_v17  ;;  %v1853_v17 = vld [vmem:[#allocation8 + $0x2a0] sm:$0xff] }
 0x3c9   : > { %1708 = vmatprep.subr.mxu0 %v1541_v18  ;;  %v1851_v18 = vld [vmem:[#allocation8 + $0x290] sm:$0xff] }
 0x3ca   : > { %1709 = vmatpush1.msra.mxu0 %v1540_v22  ;;  %v1849_v22 = vld [vmem:[#allocation8 + $0x280] sm:$0xff] }
 0x3cb   : > { %1710 = vmatprep.subr.mxu0 %v1539_v54  ;;  %v1847_v54 = vld [vmem:[#allocation8 + $0x270] sm:$0xff] }
 0x3cc   : > { %1711 = vmatpush1.msra.mxu0 %v1538_v28  ;;  %v1845_v28 = vld [vmem:[#allocation8 + $0x260] sm:$0xff] }
 0x3cd   : > { %1712 = vmatprep.subr.mxu0 %v1537_v30  ;;  %v1843_v30 = vld [vmem:[#allocation8 + $0x250] sm:$0xff] }
 0x3ce   : > { %1713 = vmatpush1.msra.mxu0 %v1536_v36  ;;  %v1841_v36 = vld [vmem:[#allocation8 + $0x240] sm:$0xff] }
 0x3cf   : > { %1714 = vmatprep.subr.mxu0 %v1535_v38  ;;  %v1839_v38 = vld [vmem:[#allocation8 + $0x230] sm:$0xff] }
 0x3d0   : > { %1715 = vmatpush1.msra.mxu0 %v1534_v23  ;;  %v1837_v23 = vld [vmem:[#allocation8 + $0x220] sm:$0xff] }
 0x3d1   : > { %1716 = vmatprep.subr.mxu0 %v1533_v42  ;;  %v1835_v42 = vld [vmem:[#allocation8 + $0x210] sm:$0xff] }
 0x3d2   : > { %1717 = vmatpush1.msra.mxu0 %v1532_v57  ;;  %v1833_v57 = vld [vmem:[#allocation8 + $0x200] sm:$0xff] }
 0x473   : > { %v1468_v0 = vpop.f32.mrf.mxu0 }
 0x474   : > { %v1495_v43 = vadd.f32 %v1468_v0, %v2794_v62 }
 0x475   : > { %v2816_v4 = vpop.f32.mrf.mxu0 }
 0x476   : > { %1499 = vst [vmem:[#allocation2 + $0x8] sm:$0xff] %v1495_v43 }
 0x477   : > { %v1474_v34 = vpop.f32.mrf.mxu0 }
 0x478   : > { %v1496_v20 = vadd.f32 %v1474_v34, %v2801_v59 }
 0x479   : > { %v2819_v45 = vpop.f32.mrf.mxu0 }
 0x47a   : > { %1500 = vst [vmem:[#allocation2 + $0x10] sm:$0xff] %v1496_v20 }
 0x47b   : > { %v1480_v24 = vpop.f32.mrf.mxu0 }
 0x47c   : > { %v1497_v25 = vadd.f32 %v1480_v24, %v2806_v7 }
 0x47d   : > { %v2823_v33 = vpop.f32.mrf.mxu0  ;;  %v1523_v31 = vld [vmem:[#allocation2 + $0x7] sm:$0xff] }
 0x47e   : > { %v1507_v32 = vld [vmem:[#allocation2 + $0x3] sm:$0xff]  ;;  %1501 = vst [vmem:[#allocation2 + $0x18] sm:$0xff] %v1497_v25  ;;  %2128 = vmatmul.mubr.msk.f32.vlgmr.msra.gmra.mxu1 %vm426_vm2, %v1523_v31 }
 0x47f   : > { %2130 = vmatmul.mubr.msk.f32.vlgmr.msra.gmra.mxu0 %vm1503_vm8, %v1507_v32  ;;  %v1486_v62 = vpop.f32.mrf.mxu0  ;;  %1667 = vmatprep.mubr.f32.mxu1 %v2798_v56 }
 0x480   : > { %1756 = vmatprep.mubr.f32.mxu0 %v2798_v56  ;;  %v1498_v59 = vadd.f32 %v1486_v62, %v2811_v52  ;;  %v1864_v52 = vld [vmem:[#allocation8 + $0x2f8] sm:$0xff] }
 0x481   : > { %v1524_v40 = vld [vmem:[#allocation2 + $0xf] sm:$0xff]  ;;  %1865 = vmatprep.subr.mxu0 %v1864_v52  ;;  %2158 = vmatprep.subr.mxu1 %v1864_v52  ;;  %v2839_v0 = vpop.f32.mrf.mxu0 }
 0x482   : > { %v1508_v58 = vld [vmem:[#allocation2 + $0xb] sm:$0xff]  ;;  %1502 = vst [vmem:[#allocation2 + $0x20] sm:$0xff] %v1498_v59  ;;  %1668 = vmatmul.mubr.f32.gmra.mxu1 %v1524_v40  ;;  %1866 = vmatpush1.msra.mxu0 %v1863_v51 }
 0x483   : > { %1757 = vmatmul.mubr.f32.gmra.mxu0 %v1508_v58  ;;  %1673 = vmatprep.mubr.f32.mxu1 %v2798_v56 }
 0x484   : > { %1762 = vmatprep.mubr.f32.mxu0 %v2798_v56  ;;  %2174 = vmatpush1.msra.mxu1 %v1863_v51 }
 0x485   : > { %v1525_v21 = vld [vmem:[#allocation2 + $0x17] sm:$0xff]  ;;  %1867 = vmatprep.subr.mxu0 %v1862_v26  ;;  %2159 = vmatprep.subr.mxu1 %v1862_v26 }
 0x486   : > { %v1509_v7 = vld [vmem:[#allocation2 + $0x13] sm:$0xff]  ;;  %2129 = vmatmul.mubr.msk.f32.gmra.mxu1 %vm428_vm4, %v1525_v21  ;;  %1868 = vmatpush1.msra.mxu0 %v1861_v10 }
 0x487   : > { %2131 = vmatmul.mubr.msk.f32.gmra.mxu0 %vm1505_vm9, %v1509_v7  ;;  %1679 = vmatprep.mubr.f32.mxu1 %v2798_v56 }
 0x488   : > { %1768 = vmatprep.mubr.f32.mxu0 %v2798_v56  ;;  %2175 = vmatpush1.msra.mxu1 %v1861_v10 }
 0x489   : > { %v1526_v8 = vld [vmem:[#allocation2 + $0x1f] sm:$0xff]  ;;  %1869 = vmatprep.subr.mxu0 %v1860_v11  ;;  %2160 = vmatprep.subr.mxu1 %v1860_v11 }
 0x48a   : > { %v1510_v9 = vld [vmem:[#allocation2 + $0x1b] sm:$0xff]  ;;  %1680 = vmatmul.mubr.f32.gmra.mxu1 %v1526_v8  ;;  %1870 = vmatpush1.msra.mxu0 %v1859_v61 }
 0x48b   : > { %1769 = vmatmul.mubr.f32.gmra.mxu0 %v1510_v9  ;;  %1935 = vmatprep.mubr.f32.mxu1 %v2798_v56 }
 0x48c   : > { %1929 = vmatprep.mubr.f32.mxu0 %v2798_v56  ;;  %2176 = vmatpush1.msra.mxu1 %v1859_v61 }
 0x48d   : > { %1871 = vmatprep.subr.mxu0 %v1858_v13  ;;  %2161 = vmatprep.subr.mxu1 %v1858_v13 }
 0x48e   : > { %1872 = vmatpush1.msra.mxu0 %v1857_v15  ;;  %2177 = vmatpush1.msra.mxu1 %v1857_v15 }
 0x48f   : > { %1873 = vmatprep.subr.mxu0 %v1856_v6  ;;  %2162 = vmatprep.subr.mxu1 %v1856_v6 }
 0x490   : > { %1874 = vmatpush1.msra.mxu0 %v1855_v16  ;;  %2178 = vmatpush1.msra.mxu1 %v1855_v16 }
 0x491   : > { %1875 = vmatprep.subr.mxu0 %v1854_v44  ;;  %2163 = vmatprep.subr.mxu1 %v1854_v44 }
 0x492   : > { %1876 = vmatpush1.msra.mxu0 %v1853_v17  ;;  %2179 = vmatpush1.msra.mxu1 %v1853_v17 }
 0x493   : > { %1877 = vmatprep.subr.mxu0 %v1852_v14  ;;  %2164 = vmatprep.subr.mxu1 %v1852_v14 }
 0x494   : > { %1878 = vmatpush1.msra.mxu0 %v1851_v18  ;;  %2180 = vmatpush1.msra.mxu1 %v1851_v18 }
 0x495   : > { %1879 = vmatprep.subr.mxu0 %v1850_v27  ;;  %2165 = vmatprep.subr.mxu1 %v1850_v27 }
 0x496   : > { %1880 = vmatpush1.msra.mxu0 %v1849_v22  ;;  %2181 = vmatpush1.msra.mxu1 %v1849_v22 }
 0x497   : > { %1881 = vmatprep.subr.mxu0 %v1848_v46  ;;  %2166 = vmatprep.subr.mxu1 %v1848_v46 }
 0x498   : > { %1882 = vmatpush1.msra.mxu0 %v1847_v54  ;;  %2182 = vmatpush1.msra.mxu1 %v1847_v54 }
 0x499   : > { %1883 = vmatprep.subr.mxu0 %v1846_v19  ;;  %2167 = vmatprep.subr.mxu1 %v1846_v19 }
 0x49a   : > { %1884 = vmatpush1.msra.mxu0 %v1845_v28  ;;  %2183 = vmatpush1.msra.mxu1 %v1845_v28 }
 0x49b   : > { %1885 = vmatprep.subr.mxu0 %v1844_v29  ;;  %2168 = vmatprep.subr.mxu1 %v1844_v29 }
 0x49c   : > { %1886 = vmatpush1.msra.mxu0 %v1843_v30  ;;  %2184 = vmatpush1.msra.mxu1 %v1843_v30 }
 0x49d   : > { %1887 = vmatprep.subr.mxu0 %v1842_v60  ;;  %2169 = vmatprep.subr.mxu1 %v1842_v60 }
 0x49e   : > { %1888 = vmatpush1.msra.mxu0 %v1841_v36  ;;  %2185 = vmatpush1.msra.mxu1 %v1841_v36 }
 0x49f   : > { %1889 = vmatprep.subr.mxu0 %v1840_v37  ;;  %2170 = vmatprep.subr.mxu1 %v1840_v37 }
 0x4a0   : > { %1890 = vmatpush1.msra.mxu0 %v1839_v38  ;;  %2186 = vmatpush1.msra.mxu1 %v1839_v38 }
 0x4a1   : > { %1891 = vmatprep.subr.mxu0 %v1838_v39  ;;  %2171 = vmatprep.subr.mxu1 %v1838_v39 }
 0x4a2   : > { %1892 = vmatpush1.msra.mxu0 %v1837_v23  ;;  %2187 = vmatpush1.msra.mxu1 %v1837_v23 }
 0x4a3   : > { %1893 = vmatprep.subr.mxu0 %v1836_v41  ;;  %2172 = vmatprep.subr.mxu1 %v1836_v41 }
 0x4a4   : > { %1894 = vmatpush1.msra.mxu0 %v1835_v42  ;;  %2188 = vmatpush1.msra.mxu1 %v1835_v42 }
 0x4a5   : > { %1895 = vmatprep.subr.mxu0 %v1834_v35  ;;  %2173 = vmatprep.subr.mxu1 %v1834_v35 }
 0x4a6   : > { %1896 = vmatpush1.msra.mxu0 %v1833_v57  ;;  %2189 = vmatpush1.msra.mxu1 %v1833_v57 }
 0x53e   : > { %v1663_v43 = vpop.f32.mrf.mxu1 }
 0x53f   : > { %v1752_v34 = vpop.f32.mrf.mxu0 }
 0x540   : > { %v1665_v20 = vpop.f32.mrf.mxu1  ;;  %v1753_v54 = vadd.f32 %v1752_v34, %v1663_v43 }
 0x541   : > { %v1754_v24 = vpop.f32.mrf.mxu0 }
 0x542   : > { %v1755_v25 = vadd.f32 %v1754_v24, %v1665_v20  ;;  %v1669_v31 = vpop.f32.mrf.mxu1  ;;  %v1796_v28 = vadd.f32 %v2707_v47, %v1753_v54 }
 0x543   : > { %v1758_v32 = vpop.f32.mrf.mxu0 }
 0x544   : > { %v1797_v62 = vadd.f32 %v2710_v48, %v1755_v25  ;;  %v1671_v59 = vpop.f32.mrf.mxu1  ;;  %v1759_v29 = vadd.f32 %v1758_v32, %v1669_v31 }
 0x545   : > { %v1760_v40 = vpop.f32.mrf.mxu0 }
 0x546   : > { %v2133_v58 = vmul.f32 -1.442695, %v1797_v62  ;;  %v1761_v21 = vadd.f32 %v1760_v40, %v1671_v59  ;;  %v1675_v7 = vpop.f32.mrf.mxu1  ;;  %v1798_v60 = vadd.f32 %v2713_v49, %v1759_v29  ;;  %v1493_v62 = vadd.f32 %v2823_v33, %v2771_v5 }
 0x547   : > { %v1764_v8 = vpop.f32.mrf.mxu0 }
 0x548   : > { %2300 = vpow2.f32 %v2133_v58  ;;  %v1799_v9 = vadd.f32 %v2716_v50, %v1761_v21  ;;  %v1677_v52 = vpop.f32.mrf.mxu1  ;;  %v1765_v36 = vadd.f32 %v1764_v8, %v1675_v7 }
 0x549   : > { %v1766_v51 = vpop.f32.mrf.mxu0 }
 0x54a   : > { %v2134_v26 = vmul.f32 -1.442695, %v1799_v9  ;;  %v1767_v10 = vadd.f32 %v1766_v51, %v1677_v52  ;;  %v1681_v11 = vpop.f32.mrf.mxu1  ;;  %v1800_v39 = vadd.f32 %v2735_v63, %v1765_v36  ;;  %v1491_v63 = vadd.f32 %v2816_v4, %v2764_v53 }
 0x54b   : > { %v1770_v61 = vpop.f32.mrf.mxu0 }
 0x54c   : > { %2302 = vpow2.f32 %v2134_v26  ;;  %v1801_v13 = vadd.f32 %v2738_v1, %v1767_v10  ;;  %v1683_v15 = vpop.f32.mrf.mxu1  ;;  %v1771_v23 = vadd.f32 %v1770_v61, %v1681_v11 }
 0x54d   : > { %v1772_v48 = vpop.f32.mrf.mxu0 }
 0x54e   : > { %v2135_v6 = vmul.f32 -1.442695, %v1801_v13  ;;  %v1773_v16 = vadd.f32 %v1772_v48, %v1683_v15  ;;  %v1802_v42 = vadd.f32 %v2741_v2, %v1771_v23  ;;  %v1492_v2 = vadd.f32 %v2819_v45, %v2767_v12 }
 0x54f   : > { %v1494_v12 = vadd.f32 %v2839_v0, %v2787_v55 }
 0x550   : > { %2304 = vpow2.f32 %v2135_v6  ;;  %v1803_v44 = vadd.f32 %v2744_v3, %v1773_v16 }
 0x552   : > { %v2136_v17 = vmul.f32 -1.442695, %v1803_v44 }
 0x554   : > { %2306 = vpow2.f32 %v2136_v17 }
 0x555   : > { %v2301_v14 = vpop.eup %2300 }
 0x556   : > { %v1816_v50 = vadd.f32 1.0, %v2301_v14 }
 0x558   : > { %2308 = vrcp.f32 %v1816_v50 }
 0x559   : > { %v2303_v18 = vpop.eup %2302 }
 0x55a   : > { %v1817_v27 = vadd.f32 1.0, %v2303_v18 }
 0x55c   : > { %2310 = vrcp.f32 %v1817_v27 }
 0x55d   : > { %v2305_v22 = vpop.eup %2304 }
 0x55e   : > { %v1818_v46 = vadd.f32 1.0, %v2305_v22 }
 0x560   : > { %2312 = vrcp.f32 %v1818_v46 }
 0x561   : > { %v2307_v1 = vpop.eup %2306 }
 0x562   : > { %v1819_v19 = vadd.f32 1.0, %v2307_v1 }
 0x564   : > { %2314 = vrcp.f32 %v1819_v19 }
 0x565   : > { %v2309_v30 = vpop.eup %2308 }
 0x566   : > { %v1828_v3 = vmul.f32 %v2309_v30, %v1796_v28 }
 0x568   : > { %1930 = vmatmul.mubr.f32.vlgmr.msra.gmra.mxu0 %v1828_v3 }
 0x569   : > { %v2311_v37 = vpop.eup %2310 }
 0x56a   : > { %v1829_v38 = vmul.f32 %v2311_v37, %v1798_v60 }
 0x56c   : > { %1936 = vmatmul.mubr.f32.vlgmr.msra.gmra.mxu1 %v1829_v38 }
 0x56d   : > { %v2313_v41 = vpop.eup %2312  ;;  %1941 = vmatprep.mubr.f32.mxu1 %v2798_v56 }
 0x56e   : > { %v1830_v47 = vmul.f32 %v2313_v41, %v1800_v39 }
 0x570   : > { %1942 = vmatmul.mubr.f32.gmra.mxu1 %v1830_v47 }
 0x571   : > { %v2315_v35 = vpop.eup %2314  ;;  %1947 = vmatprep.mubr.f32.mxu1 %v2798_v56 }
 0x572   : > { %v1831_v49 = vmul.f32 %v2315_v35, %v1802_v42 }
 0x574   : > { %1948 = vmatmul.mubr.f32.gmra.mxu1 %v1831_v49 }
 0x628   : > { %v1931_v57 = vpop.f32.mrf.mxu0 }
 0x629   : > { %v1958_v43 = vadd.f32 %v1931_v57, %v1828_v3 }
 0x62a   : > { %v1933_v34 = vpop.f32.mrf.mxu0 }
 0x62b   : > { %1962 = vst [vmem:[%s359_s18] sm:$0xff] %v1958_v43  ;;  %v1954_v20 = vadd.f32 %v1933_v34, %v1491_v63 }
 0x62c   : > { %v1937_v24 = vpop.f32.mrf.mxu1 }
 0x62d   : > { %1966 = vst [vmem:[%s359_s18 + $0x8] sm:$0xff] %v1954_v20  ;;  %v1959_v56 = vadd.f32 %v1937_v24, %v1829_v38 }
 0x62e   : > { %v1939_v25 = vpop.f32.mrf.mxu1 }
 0x62f   : > { %1963 = vst [vmem:[%s359_s18 + $0x10] sm:$0xff] %v1959_v56  ;;  %v1955_v31 = vadd.f32 %v1939_v25, %v1492_v2 }
 0x630   : > { %v1943_v32 = vpop.f32.mrf.mxu1 }
 0x631   : > { %1967 = vst [vmem:[%s359_s18 + $0x18] sm:$0xff] %v1955_v31  ;;  %v1960_v53 = vadd.f32 %v1943_v32, %v1830_v47 }
 0x632   : > { %v1945_v4 = vpop.f32.mrf.mxu1 }
 0x633   : > { %1964 = vst [vmem:[%s359_s18 + $0x20] sm:$0xff] %v1960_v53  ;;  %v1956_v59 = vadd.f32 %v1945_v4, %v1493_v62 }
 0x634   : > { %v1949_v40 = vpop.f32.mrf.mxu1 }
 0x635   : > { %1968 = vst [vmem:[%s359_s18 + $0x28] sm:$0xff] %v1956_v59  ;;  %v1961_v45 = vadd.f32 %v1949_v40, %v1831_v49 }
 0x636   : > { %v1951_v5 = vpop.f32.mrf.mxu1 }
 0x637   : > { %1965 = vst [vmem:[%s359_s18 + $0x30] sm:$0xff] %v1961_v45  ;;  %v1957_v33 = vadd.f32 %v1951_v5, %v1494_v12 }
 0x639   : > { %1969 = vst [vmem:[%s359_s18 + $0x38] sm:$0xff] %v1957_v33 }
 0x63a   : > { %2408 = shalt.err (!%p2405_p0)
}
 0x63b   : > { %s2409_s26 = scalar_lea.hbm %s2868_s12, 1024  ;;  %s2413_s18 = scalar_lea.hbm %s2920_s8, 2048 }
 0x63c   : > { %p2410_p6 = scmp.ne.s32.totalorder %s2868_s12, %s2409_s26  ;;  %p2414_p1 = scmp.lt.s32.totalorder %s2868_s12, %s2920_s8 }
 0x63d   : > { %p2415_p5 = scmp.lt.s32.totalorder %s2413_s18, %s2409_s26 }
 0x63e   : > { %p2411_p9 = pnand %p2410_p6, %p2931_p12 }
 0x63f   : > { %p2416_p3 = por %p2415_p5, %p2414_p1 }
 0x640   : > { %p2412_p13 = pneg %p2411_p9 }
 0x642   : > { %p2417_p10 = pnand %p2416_p3, %p2412_p13 }
 0x644   : > { %2420 = shalt.err (!%p2417_p10)
}
 0x645   : > { %s2473_s25 = smov 256   ;;  %s2474_s20 = smov 16  }
 0x646   : > { %2202 = dma.vmem_to_hbm [thread:$0]  (%p2931_p12), %s2863_s21, 1024, %s2868_s12, %s2872_s9, %s2473_s25, %s2473_s25, %s2474_s20  }
 0x647 PF: > { %p2224_p2 = scmp.ge.s32.totalorder %s2463_s30, 2  ;;  %s2000_s17 = sand.u32 1, %s2451_s27  }
 0x648   : > { %p2932_p4 = scmp.ne.s32.totalorder %s2924_s16, 0  ;;  %s2001_s22 = scalar_lea.sflag [#allocation5], %s2000_s17 }
 0x64a   : > { %p2215_p7 = pnand %p2224_p2, %p2932_p4 }
 0x64c   : > { %p2216_p8 = pneg %p2215_p7 }
 0x64e   : > { %2446 = dma.done.wait (%p2216_p8), %s2001_s22, 1024  }
 0x64f   : > { %2448 = vsyncadd (%p2216_p8), %s2001_s22, 4294966272  ;;  %p20_p11 = scmp.ge.s32.totalorder %s2545_s11, 4   ;;  %s2933_s27 = smov %s2455_s28 }
 0x650   : > { %s2934_s28 = smov %s2459_s29  ;;  %s2935_s29 = smov %s2556_s14 }
 0x651   : > { %s2936_s30 = smov %s2545_s11  ;;  %22 = sbr.rel (!%p20_p11) target bundleno = 5 (0x5), region = 111 }
 0x656   :  { %2006 = vsyncpa [#allocation4], 1 }
 0x657   :  { %2008 = vsyncpa [#allocation4 + $0x1], 1 }
 0x658   :  { %2009 = vsyncpa [#allocation7], 1 }
 0x659   :  { %2010 = vsyncpa [#allocation5], 1 }
 0x65a   :  { %2012 = vsyncpa [#allocation5 + $0x1], 1 }

</bundles_post_ra>
